<compile_context>
chip_gen: v6e
topology: v6e:2x2x1
jax: 0.10.0
libtpu: 0.0.40
codegen_flags: <defaults>
</compile_context>

<pallas_src>
import functools

import jax
import jax.numpy as jnp
from jax import lax
from jax.experimental import pallas as pl
from jax.experimental.pallas import tpu as pltpu


# ----------------------------------------------------------------------------
# Fused bidirectional multi-layer GRU kernel (batch = 1), single invocation.
#
# Refs:
#   x_ref   : (S, 2*Dmax)     layer-0 input slab [x | x_reversed] (f32)
#   wx_ref  : (L, 2*Dmax, 6H) bf16 input weights; gate-major cols [r_f r_b z_f z_b n_f n_b];
#                             rows 0:Din feed fwd cols (time order), rows Dmax:Dmax+Din
#                             feed bwd cols (reversed time order)
#   bx_ref  : (L, 1, 6H)      f32 input-side gate biases (b_ih+b_hh for r/z, b_ih for n)
#   wh_ref  : (L, 2H, 6H)     bf16 block-diagonal recurrent weights, same column layout
#   bnh_ref : (L, 1, 2H)      f32 b_hh of the n gate [fwd | bwd]
#   out_ref : (S, H)          final output (fwd + bwd of last layer)
#   hid_ref : (L, H)          per-layer final hidden (fwd + bwd)
# Scratch:
#   x_scr   : (S, 2*Dmax)     next layer's input slab [x | x_reversed]
#   gx_scr  : (S, 6H)         direction-merged input-side gate preactivations
# ----------------------------------------------------------------------------
def bigru_stack_kernel(x_ref, wx_ref, bx_ref, wh_ref, bnh_ref,
                       out_ref, hid_ref, x_scr, gx_scr):
    S, H = out_ref.shape
    L = wx_ref.shape[0]
    d_max = x_ref.shape[1] // 2
    unroll = True if S <= 32 else 8   # guard full unroll for long sequences

    # Only needed when embed_dim > 2H (stale-scratch * 0 could be NaN otherwise).
    if d_max > 2 * H:
        x_scr[...] = jnp.zeros_like(x_scr)

    for l in range(L):                      # static Python loop: zero grid overhead
        # ---- input-side gate preactivations, both directions, ONE wide matmul ----
        # Layer 0 reads the caller-provided slab directly (no VMEM->VMEM copy).
        src = x_ref if l == 0 else x_scr
        gx_scr[...] = (
            jnp.dot(src[...].astype(jnp.bfloat16), wx_ref[l],
                    preferred_element_type=jnp.float32)
            + bx_ref[l])                    # (S, 6H); fwd cols = time t, bwd cols = time S-1-t

        # Loop-invariant loads hoisted out of the recurrence.
        wh = wh_ref[l]                      # (2H, 6H) bf16 block-diagonal
        bnh = bnh_ref[l]                    # (1, 2H)  f32
        last_layer = (l == L - 1)

        def step(t, h):
            # h : (1, 2H) f32 = [h_fwd | h_bwd], kept in vregs (loop carry).
            g = gx_scr[pl.ds(t, 1), :]                          # ONE merged row, (1, 6H)
            # Single MXU op per step: both directions, all three gates.
            gh = jnp.dot(h.astype(jnp.bfloat16), wh,
                         preferred_element_type=jnp.float32)    # (1, 6H)
            # Fused r/z sigmoid: 4H lanes (= exactly one 128-lane vreg at H=32).
            sig = jax.nn.sigmoid(g[:, 0:4 * H] + gh[:, 0:4 * H])
            r = sig[:, 0:2 * H]
            z = sig[:, 2 * H:4 * H]
            n = jnp.tanh(g[:, 4 * H:6 * H] + r * (gh[:, 4 * H:6 * H] + bnh))
            h_new = (1.0 - z) * n + z * h                       # (1, 2H)

            hf = h_new[:, 0:H]          # fwd output for time position t
            hb = h_new[:, H:2 * H]      # bwd output for time position S-1-t

            # Time-ordered half of the next-layer input slab (also the final
            # output source).  Safe to overwrite: this layer's gx is already
            # captured in gx_scr.
            x_scr[pl.ds(t, 1), pl.ds(0, H)] = hf
            x_scr[pl.ds(S - 1 - t, 1), pl.ds(H, H)] = hb
            if not last_layer:
                # Reversed-time half: feeds the next layer's bwd direction, so the
                # next layer's direction merge is free (no per-step select/reverse).
                x_scr[pl.ds(S - 1 - t, 1), pl.ds(d_max, H)] = hf
                x_scr[pl.ds(t, 1), pl.ds(d_max + H, H)] = hb
            return h_new

        h_final = lax.fori_loop(0, S, step,
                                jnp.zeros((1, 2 * H), jnp.float32),
                                unroll=unroll)

        # Per-layer final hidden: fwd + bwd.
        hid_ref[pl.ds(l, 1), :] = h_final[:, 0:H] + h_final[:, H:2 * H]

    # Final output (last layer only): sum of the two directions.
    xs = x_scr[...]
    out_ref[...] = xs[:, 0:H] + xs[:, H:2 * H]


def bigru_stack_pallas(x_emb, packed, hidden_size):
    """Run the whole bidirectional GRU stack in one (grid-less) pallas_call."""
    wx_all, bx_all, wh_all, bnh_all = packed
    S, E = x_emb.shape
    L, two_dmax, six_h = wx_all.shape
    H = hidden_size
    d_max = two_dmax // 2
    assert six_h == 6 * H

    # Layer-0 input slab: [x | x_reversed] so the kernel's single per-layer matmul
    # produces already direction-merged gate preactivations.
    x = x_emb.astype(jnp.float32)
    xx = jnp.zeros((S, 2 * d_max), jnp.float32)
    xx = xx.at[:, :E].set(x)
    xx = xx.at[:, d_max:d_max + E].set(x[::-1])

    out2d, hid2d = pl.pallas_call(
        bigru_stack_kernel,
        out_shape=(jax.ShapeDtypeStruct((S, H), jnp.float32),
                   jax.ShapeDtypeStruct((L, H), jnp.float32)),
        in_specs=[pl.BlockSpec(memory_space=pltpu.MemorySpace.VMEM)] * 5,
        out_specs=(pl.BlockSpec(memory_space=pltpu.MemorySpace.VMEM),
                   pl.BlockSpec(memory_space=pltpu.MemorySpace.VMEM)),
        scratch_shapes=[
            pltpu.VMEM((S, 2 * d_max), jnp.float32),   # next-layer input slab
            pltpu.VMEM((S, 6 * H), jnp.float32),       # merged gate preactivations
        ],
        compiler_params=pltpu.CompilerParams(
            vmem_limit_bytes=32 * 1024 * 1024),
    )(xx, wx_all, bx_all, wh_all, bnh_all)
    return out2d, hid2d


# ----------------------------------------------------------------------------
# Module glue: embedding lookup with max_norm (plain JAX gather) + wrapper.
# ----------------------------------------------------------------------------
def embedding_lookup(weight, idx, max_norm=1.0):
    # TODO(synk): PyTorch's max_norm also renorms the embedding weight in place;
    # only the forward-pass scaling is mirrored here.
    rows = weight[idx]                                    # (S, E) gather
    norm = jnp.sqrt(jnp.sum(rows * rows, axis=-1, keepdims=True))
    scale = jnp.where(norm > max_norm, max_norm / (norm + 1e-7), 1.0)
    return rows * scale


@functools.partial(jax.jit, static_argnames=("hidden_size",))
def rnn_en_forward_pallas(input_sentence, embedding, packed, hidden_size):
    """Mirrors RNN_en.forward for batch_size = 1 using the fused Pallas kernel.

    Returns:
      out    : (seq_len, 1, hidden_size)
      hidden : (num_layers, 1, hidden_size)
    """
    x = embedding_lookup(embedding, input_sentence)       # (S, E)
    out2d, hid2d = bigru_stack_pallas(x, packed, hidden_size=hidden_size)
    return out2d[:, None, :], hid2d[:, None, :]


# ----------------------------------------------------------------------------
# Pure-JAX reference (same math, f32) for correctness checking.
# ----------------------------------------------------------------------------
def gru_direction_ref(x, p):
    hidden = p["whr"].shape[0]

    def step(h, xt):
        r = jax.nn.sigmoid(xt @ p["wxr"] + p["br"][0] + h @ p["whr"])
        z = jax.nn.sigmoid(xt @ p["wxz"] + p["bz"][0] + h @ p["whz"])
        n = jnp.tanh(xt @ p["wxn"] + p["bnx"][0] + r * (h @ p["whn"] + p["bnh"][0]))
        h_new = (1.0 - z) * n + z * h
        return h_new, h_new

    h0 = jnp.zeros((hidden,), jnp.float32)
    h_last, outs = lax.scan(step, h0, x)
    return outs, h_last[None, :]


def rnn_en_forward_ref(input_sentence, params, hidden_size, num_layers):
    x = embedding_lookup(params["embedding"], input_sentence)   # (S, E)
    final_hiddens = []
    for layer in range(num_layers):
        p_f = params["layers"][layer]["fwd"]
        p_b = params["layers"][layer]["bwd"]
        out_f, h_f = gru_direction_ref(x, p_f)
        out_b_rev, h_b = gru_direction_ref(x[::-1], p_b)
        out_b = out_b_rev[::-1]
        x = jnp.concatenate([out_f, out_b], axis=-1)
        final_hiddens.append(h_f[0] + h_b[0])
    out = x[:, :hidden_size] + x[:, hidden_size:]
    out = out[:, None, :]
    hidden = jnp.stack(final_hiddens, axis=0)[:, None, :]
    return out, hidden


# ----------------------------------------------------------------------------
# Parameter init (shapes follow nn.Embedding / nn.GRU) + packing for the kernel.
# ----------------------------------------------------------------------------
def init_params(key, vocab, embed_dim, hidden, num_layers):
    n_keys = 1 + num_layers * 2 * 4
    keys = jax.random.split(key, n_keys)
    params = {"embedding": jax.random.normal(keys[0], (vocab, embed_dim), jnp.float32)}
    bound = 1.0 / float(hidden) ** 0.5
    layers = []
    k = 1
    for layer in range(num_layers):
        d_in = embed_dim if layer == 0 else 2 * hidden
        dirs = {}
        for d in ("fwd", "bwd"):
            w_ih = jax.random.uniform(keys[k], (3 * hidden, d_in), jnp.float32, -bound, bound); k += 1
            w_hh = jax.random.uniform(keys[k], (3 * hidden, hidden), jnp.float32, -bound, bound); k += 1
            b_ih = jax.random.uniform(keys[k], (3 * hidden,), jnp.float32, -bound, bound); k += 1
            b_hh = jax.random.uniform(keys[k], (3 * hidden,), jnp.float32, -bound, bound); k += 1
            H = hidden
            dirs[d] = dict(
                wxr=jnp.transpose(w_ih[0:H]),       wxz=jnp.transpose(w_ih[H:2 * H]),
                wxn=jnp.transpose(w_ih[2 * H:3 * H]),
                whr=jnp.transpose(w_hh[0:H]),       whz=jnp.transpose(w_hh[H:2 * H]),
                whn=jnp.transpose(w_hh[2 * H:3 * H]),
                br=(b_ih[0:H] + b_hh[0:H])[None, :],
                bz=(b_ih[H:2 * H] + b_hh[H:2 * H])[None, :],
                bnx=b_ih[2 * H:3 * H][None, :],
                bnh=b_hh[2 * H:3 * H][None, :],
            )
        layers.append(dirs)
    params["layers"] = layers
    return params


def pack_gru_params(params, embed_dim, hidden, num_layers):
    """Pack per-direction GRU params into the direction-merged fused-kernel layout."""
    H = hidden
    d_max = max(embed_dim, 2 * H)
    zH = jnp.zeros((H, H), jnp.float32)
    wx_all, bx_all, wh_all, bnh_all = [], [], [], []
    for layer in range(num_layers):
        pf = params["layers"][layer]["fwd"]
        pb = params["layers"][layer]["bwd"]
        d_in = embed_dim if layer == 0 else 2 * H
        z_in = jnp.zeros((d_in, H), jnp.float32)
        # Gate-major columns [r_f r_b z_f z_b n_f n_b].
        # Rows 0:d_in act on the time-ordered input half (fwd columns);
        # rows d_max:d_max+d_in act on the reversed-time half (bwd columns).
        top = jnp.concatenate([pf["wxr"], z_in, pf["wxz"], z_in, pf["wxn"], z_in], axis=1)
        bot = jnp.concatenate([z_in, pb["wxr"], z_in, pb["wxz"], z_in, pb["wxn"]], axis=1)
        wxx = jnp.zeros((2 * d_max, 6 * H), jnp.float32)
        wxx = wxx.at[0:d_in, :].set(top)
        wxx = wxx.at[d_max:d_max + d_in, :].set(bot)
        bx = jnp.concatenate([pf["br"], pb["br"], pf["bz"], pb["bz"],
                              pf["bnx"], pb["bnx"]], axis=1)               # (1, 6H)
        # Block-diagonal recurrent weights: rows [h_fwd | h_bwd], same column layout.
        wh = jnp.concatenate([
            jnp.concatenate([pf["whr"], zH], axis=0),
            jnp.concatenate([zH, pb["whr"]], axis=0),
            jnp.concatenate([pf["whz"], zH], axis=0),
            jnp.concatenate([zH, pb["whz"]], axis=0),
            jnp.concatenate([pf["whn"], zH], axis=0),
            jnp.concatenate([zH, pb["whn"]], axis=0)], axis=1)             # (2H, 6H)
        bnh = jnp.concatenate([pf["bnh"], pb["bnh"]], axis=1)              # (1, 2H)
        wx_all.append(wxx); bx_all.append(bx); wh_all.append(wh); bnh_all.append(bnh)
    # Matmul operands in bf16 (MXU-native on v5e/v6e/v7x); biases stay f32.
    return (jnp.stack(wx_all).astype(jnp.bfloat16),
            jnp.stack(bx_all),
            jnp.stack(wh_all).astype(jnp.bfloat16),
            jnp.stack(bnh_all))


if __name__ == "__main__":
    VOCAB, EMBED, HIDDEN, LAYERS, SEQ = 16, 32, 32, 2, 8

    key = jax.random.PRNGKey(0)
    k_params, k_idx = jax.random.split(key)
    params = init_params(k_params, VOCAB, EMBED, HIDDEN, LAYERS)
    packed = pack_gru_params(params, EMBED, HIDDEN, LAYERS)
    sentence = jax.random.randint(k_idx, (SEQ,), 0, VOCAB, dtype=jnp.int32)

    out, hidden = rnn_en_forward_pallas(sentence, params["embedding"], packed,
                                        hidden_size=HIDDEN)
    jax.block_until_ready((out, hidden))

    assert out.shape == (SEQ, 1, HIDDEN), out.shape
    assert hidden.shape == (LAYERS, 1, HIDDEN), hidden.shape

    # Cross-check against a pure-JAX f32 reference of the same math.
    # Tolerance accounts for bf16 MXU operands in the kernel (accumulation is f32).
    out_ref, hidden_ref = rnn_en_forward_ref(sentence, params, HIDDEN, LAYERS)
    assert jnp.allclose(out, out_ref, atol=3e-2, rtol=3e-2)
    assert jnp.allclose(hidden, hidden_ref, atol=3e-2, rtol=3e-2)

    print("KERNEL_OK")
</pallas_src>

<mosaic_0001>
module attributes {stable_mosaic.version = 11 : i64} {
  func.func @bigru_stack_kernel(%arg0: memref<8x128xf32, #tpu.memory_space<vmem>>, %arg1: memref<2x128x192xbf16, #tpu.memory_space<vmem>>, %arg2: memref<2x1x192xf32, #tpu.memory_space<vmem>>, %arg3: memref<2x64x192xbf16, #tpu.memory_space<vmem>>, %arg4: memref<2x1x64xf32, #tpu.memory_space<vmem>>, %arg5: memref<8x32xf32, #tpu.memory_space<vmem>>, %arg6: memref<2x32xf32, #tpu.memory_space<vmem>>, %arg7: memref<8x128xf32, #tpu.memory_space<vmem>>, %arg8: memref<8x192xf32, #tpu.memory_space<vmem>>) attributes {dimension_semantics = [], scalar_prefetch = 0 : i64, scratch_operands = 2 : i64, tpu.core_type = #tpu.core_type<tc>} {
    %c0 = arith.constant 0 : index
    %c0_0 = arith.constant 0 : index
    %0 = vector.load %arg0[%c0, %c0_0] : memref<8x128xf32, #tpu.memory_space<vmem>>, vector<8x128xf32>
    %1 = arith.truncf %0 : vector<8x128xf32> to vector<8x128xbf16>
    %c0_1 = arith.constant 0 : index
    %c0_2 = arith.constant 0 : index
    %c0_3 = arith.constant 0 : index
    %2 = vector.load %arg1[%c0_1, %c0_2, %c0_3] : memref<2x128x192xbf16, #tpu.memory_space<vmem>>, vector<1x128x192xbf16>
    %3 = vector.shape_cast %2 : vector<1x128x192xbf16> to vector<128x192xbf16>
    %cst = arith.constant dense<0.000000e+00> : vector<8x192xf32>
    %4 = tpu.matmul %1, %3, %cst {dimension_numbers = #tpu.dot_dimension_numbers<[1], [0], [0], [1], [0, 0, 1, 1], [], []>} : vector<8x128xbf16>, vector<128x192xbf16>, vector<8x192xf32> -> vector<8x192xf32>
    %c0_4 = arith.constant 0 : index
    %c0_5 = arith.constant 0 : index
    %c0_6 = arith.constant 0 : index
    %5 = vector.load %arg2[%c0_4, %c0_5, %c0_6] : memref<2x1x192xf32, #tpu.memory_space<vmem>>, vector<1x1x192xf32>
    %6 = vector.shape_cast %5 : vector<1x1x192xf32> to vector<1x192xf32>
    %7 = vector.broadcast %6 : vector<1x192xf32> to vector<8x192xf32>
    %8 = arith.addf %4, %7 : vector<8x192xf32>
    %c0_7 = arith.constant 0 : index
    %c0_8 = arith.constant 0 : index
    %9 = vector.load %arg8[%c0_7, %c0_8] : memref<8x192xf32, #tpu.memory_space<vmem>>, vector<8x192xf32>
    tpu.vector_store %arg8[%c0_7, %c0_8], %8 {strides = array<i32>} : memref<8x192xf32, #tpu.memory_space<vmem>>, vector<8x192xf32>,
    %c0_9 = arith.constant 0 : index
    %c0_10 = arith.constant 0 : index
    %c0_11 = arith.constant 0 : index
    %10 = vector.load %arg3[%c0_9, %c0_10, %c0_11] : memref<2x64x192xbf16, #tpu.memory_space<vmem>>, vector<1x64x192xbf16>
    %11 = vector.shape_cast %10 : vector<1x64x192xbf16> to vector<64x192xbf16>
    %c0_12 = arith.constant 0 : index
    %c0_13 = arith.constant 0 : index
    %c0_14 = arith.constant 0 : index
    %12 = vector.load %arg4[%c0_12, %c0_13, %c0_14] : memref<2x1x64xf32, #tpu.memory_space<vmem>>, vector<1x1x64xf32>
    %13 = vector.shape_cast %12 : vector<1x1x64xf32> to vector<1x64xf32>
    %cst_15 = arith.constant 0.000000e+00 : f32
    %14 = vector.broadcast %cst_15 : f32 to vector<1x64xf32>
    %c0_i32 = arith.constant 0 : i32
    %15 = arith.index_cast %c0_i32 : i32 to index
    %c0_16 = arith.constant 0 : index
    %16 = vector.load %arg8[%15, %c0_16] : memref<8x192xf32, #tpu.memory_space<vmem>>, vector<1x192xf32>
    %17 = arith.truncf %14 : vector<1x64xf32> to vector<1x64xbf16>
    %cst_17 = arith.constant dense<0.000000e+00> : vector<1x192xf32>
    %18 = tpu.matmul %17, %11, %cst_17 {dimension_numbers = #tpu.dot_dimension_numbers<[1], [0], [0], [1], [0, 0, 1, 1], [], []>} : vector<1x64xbf16>, vector<64x192xbf16>, vector<1x192xf32> -> vector<1x192xf32>
    %19 = vector.extract_strided_slice %16 {offsets = [0, 0], sizes = [1, 128], strides = [1, 1]} : vector<1x192xf32> to vector<1x128xf32>
    %20 = vector.extract_strided_slice %18 {offsets = [0, 0], sizes = [1, 128], strides = [1, 1]} : vector<1x192xf32> to vector<1x128xf32>
    %21 = arith.addf %19, %20 : vector<1x128xf32>
    %22 = arith.negf %21 : vector<1x128xf32>
    %23 = math.exp %22 : vector<1x128xf32>
    %cst_18 = arith.constant 1.000000e+00 : f32
    %24 = vector.broadcast %cst_18 : f32 to vector<1x128xf32>
    %25 = arith.addf %24, %23 : vector<1x128xf32>
    %26 = arith.divf %24, %25 : vector<1x128xf32>
    %27 = vector.extract_strided_slice %26 {offsets = [0, 0], sizes = [1, 64], strides = [1, 1]} : vector<1x128xf32> to vector<1x64xf32>
    %28 = vector.extract_strided_slice %26 {offsets = [0, 64], sizes = [1, 64], strides = [1, 1]} : vector<1x128xf32> to vector<1x64xf32>
    %29 = vector.extract_strided_slice %16 {offsets = [0, 128], sizes = [1, 64], strides = [1, 1]} : vector<1x192xf32> to vector<1x64xf32>
    %30 = vector.extract_strided_slice %18 {offsets = [0, 128], sizes = [1, 64], strides = [1, 1]} : vector<1x192xf32> to vector<1x64xf32>
    %31 = arith.addf %30, %13 : vector<1x64xf32>
    %32 = arith.mulf %27, %31 : vector<1x64xf32>
    %33 = arith.addf %29, %32 : vector<1x64xf32>
    %34 = math.tanh %33 : vector<1x64xf32>
    %cst_19 = arith.constant 1.000000e+00 : f32
    %35 = vector.broadcast %cst_19 : f32 to vector<1x64xf32>
    %36 = arith.subf %35, %28 : vector<1x64xf32>
    %37 = arith.mulf %36, %34 : vector<1x64xf32>
    %38 = arith.mulf %28, %14 : vector<1x64xf32>
    %39 = arith.addf %37, %38 : vector<1x64xf32>
    %40 = vector.extract_strided_slice %39 {offsets = [0, 0], sizes = [1, 32], strides = [1, 1]} : vector<1x64xf32> to vector<1x32xf32>
    %41 = vector.extract_strided_slice %39 {offsets = [0, 32], sizes = [1, 32], strides = [1, 1]} : vector<1x64xf32> to vector<1x32xf32>
    %42 = arith.index_cast %c0_i32 : i32 to index
    %c0_20 = arith.constant 0 : index
    %43 = vector.load %arg7[%42, %c0_20] : memref<8x128xf32, #tpu.memory_space<vmem>>, vector<1x32xf32>
    tpu.vector_store %arg7[%42, %c0_20], %40 {strides = array<i32>} : memref<8x128xf32, #tpu.memory_space<vmem>>, vector<1x32xf32>,
    %c7_i32 = arith.constant 7 : i32
    %44 = arith.subi %c7_i32, %c0_i32 : i32
    %45 = arith.index_cast %44 : i32 to index
    %c32 = arith.constant 32 : index
    %46 = vector.load %arg7[%45, %c32] : memref<8x128xf32, #tpu.memory_space<vmem>>, vector<1x32xf32>
    tpu.vector_store %arg7[%45, %c32], %41 {strides = array<i32>} : memref<8x128xf32, #tpu.memory_space<vmem>>, vector<1x32xf32>,
    %c7_i32_21 = arith.constant 7 : i32
    %47 = arith.subi %c7_i32_21, %c0_i32 : i32
    %48 = arith.index_cast %47 : i32 to index
    %c64 = arith.constant 64 : index
    %49 = vector.load %arg7[%48, %c64] : memref<8x128xf32, #tpu.memory_space<vmem>>, vector<1x32xf32>
    tpu.vector_store %arg7[%48, %c64], %40 {strides = array<i32>} : memref<8x128xf32, #tpu.memory_space<vmem>>, vector<1x32xf32>,
    %50 = arith.index_cast %c0_i32 : i32 to index
    %c96 = arith.constant 96 : index
    %51 = vector.load %arg7[%50, %c96] : memref<8x128xf32, #tpu.memory_space<vmem>>, vector<1x32xf32>
    tpu.vector_store %arg7[%50, %c96], %41 {strides = array<i32>} : memref<8x128xf32, #tpu.memory_space<vmem>>, vector<1x32xf32>,
    %c1_i32 = arith.constant 1 : i32
    %52 = arith.index_cast %c1_i32 : i32 to index
    %c0_22 = arith.constant 0 : index
    %53 = vector.load %arg8[%52, %c0_22] : memref<8x192xf32, #tpu.memory_space<vmem>>, vector<1x192xf32>
    %54 = arith.truncf %39 : vector<1x64xf32> to vector<1x64xbf16>
    %cst_23 = arith.constant dense<0.000000e+00> : vector<1x192xf32>
    %55 = tpu.matmul %54, %11, %cst_23 {dimension_numbers = #tpu.dot_dimension_numbers<[1], [0], [0], [1], [0, 0, 1, 1], [], []>} : vector<1x64xbf16>, vector<64x192xbf16>, vector<1x192xf32> -> vector<1x192xf32>
    %56 = vector.extract_strided_slice %53 {offsets = [0, 0], sizes = [1, 128], strides = [1, 1]} : vector<1x192xf32> to vector<1x128xf32>
    %57 = vector.extract_strided_slice %55 {offsets = [0, 0], sizes = [1, 128], strides = [1, 1]} : vector<1x192xf32> to vector<1x128xf32>
    %58 = arith.addf %56, %57 : vector<1x128xf32>
    %59 = arith.negf %58 : vector<1x128xf32>
    %60 = math.exp %59 : vector<1x128xf32>
    %cst_24 = arith.constant 1.000000e+00 : f32
    %61 = vector.broadcast %cst_24 : f32 to vector<1x128xf32>
    %62 = arith.addf %61, %60 : vector<1x128xf32>
    %63 = arith.divf %61, %62 : vector<1x128xf32>
    %64 = vector.extract_strided_slice %63 {offsets = [0, 0], sizes = [1, 64], strides = [1, 1]} : vector<1x128xf32> to vector<1x64xf32>
    %65 = vector.extract_strided_slice %63 {offsets = [0, 64], sizes = [1, 64], strides = [1, 1]} : vector<1x128xf32> to vector<1x64xf32>
    %66 = vector.extract_strided_slice %53 {offsets = [0, 128], sizes = [1, 64], strides = [1, 1]} : vector<1x192xf32> to vector<1x64xf32>
    %67 = vector.extract_strided_slice %55 {offsets = [0, 128], sizes = [1, 64], strides = [1, 1]} : vector<1x192xf32> to vector<1x64xf32>
    %68 = arith.addf %67, %13 : vector<1x64xf32>
    %69 = arith.mulf %64, %68 : vector<1x64xf32>
    %70 = arith.addf %66, %69 : vector<1x64xf32>
    %71 = math.tanh %70 : vector<1x64xf32>
    %cst_25 = arith.constant 1.000000e+00 : f32
    %72 = vector.broadcast %cst_25 : f32 to vector<1x64xf32>
    %73 = arith.subf %72, %65 : vector<1x64xf32>
    %74 = arith.mulf %73, %71 : vector<1x64xf32>
    %75 = arith.mulf %65, %39 : vector<1x64xf32>
    %76 = arith.addf %74, %75 : vector<1x64xf32>
    %77 = vector.extract_strided_slice %76 {offsets = [0, 0], sizes = [1, 32], strides = [1, 1]} : vector<1x64xf32> to vector<1x32xf32>
    %78 = vector.extract_strided_slice %76 {offsets = [0, 32], sizes = [1, 32], strides = [1, 1]} : vector<1x64xf32> to vector<1x32xf32>
    %79 = arith.index_cast %c1_i32 : i32 to index
    %c0_26 = arith.constant 0 : index
    %80 = vector.load %arg7[%79, %c0_26] : memref<8x128xf32, #tpu.memory_space<vmem>>, vector<1x32xf32>
    tpu.vector_store %arg7[%79, %c0_26], %77 {strides = array<i32>} : memref<8x128xf32, #tpu.memory_space<vmem>>, vector<1x32xf32>,
    %c7_i32_27 = arith.constant 7 : i32
    %81 = arith.subi %c7_i32_27, %c1_i32 : i32
    %82 = arith.index_cast %81 : i32 to index
    %c32_28 = arith.constant 32 : index
    %83 = vector.load %arg7[%82, %c32_28] : memref<8x128xf32, #tpu.memory_space<vmem>>, vector<1x32xf32>
    tpu.vector_store %arg7[%82, %c32_28], %78 {strides = array<i32>} : memref<8x128xf32, #tpu.memory_space<vmem>>, vector<1x32xf32>,
    %c7_i32_29 = arith.constant 7 : i32
    %84 = arith.subi %c7_i32_29, %c1_i32 : i32
    %85 = arith.index_cast %84 : i32 to index
    %c64_30 = arith.constant 64 : index
    %86 = vector.load %arg7[%85, %c64_30] : memref<8x128xf32, #tpu.memory_space<vmem>>, vector<1x32xf32>
    tpu.vector_store %arg7[%85, %c64_30], %77 {strides = array<i32>} : memref<8x128xf32, #tpu.memory_space<vmem>>, vector<1x32xf32>,
    %87 = arith.index_cast %c1_i32 : i32 to index
    %c96_31 = arith.constant 96 : index
    %88 = vector.load %arg7[%87, %c96_31] : memref<8x128xf32, #tpu.memory_space<vmem>>, vector<1x32xf32>
    tpu.vector_store %arg7[%87, %c96_31], %78 {strides = array<i32>} : memref<8x128xf32, #tpu.memory_space<vmem>>, vector<1x32xf32>,
    %c2_i32 = arith.constant 2 : i32
    %89 = arith.index_cast %c2_i32 : i32 to index
    %c0_32 = arith.constant 0 : index
    %90 = vector.load %arg8[%89, %c0_32] : memref<8x192xf32, #tpu.memory_space<vmem>>, vector<1x192xf32>
    %91 = arith.truncf %76 : vector<1x64xf32> to vector<1x64xbf16>
    %cst_33 = arith.constant dense<0.000000e+00> : vector<1x192xf32>
    %92 = tpu.matmul %91, %11, %cst_33 {dimension_numbers = #tpu.dot_dimension_numbers<[1], [0], [0], [1], [0, 0, 1, 1], [], []>} : vector<1x64xbf16>, vector<64x192xbf16>, vector<1x192xf32> -> vector<1x192xf32>
    %93 = vector.extract_strided_slice %90 {offsets = [0, 0], sizes = [1, 128], strides = [1, 1]} : vector<1x192xf32> to vector<1x128xf32>
    %94 = vector.extract_strided_slice %92 {offsets = [0, 0], sizes = [1, 128], strides = [1, 1]} : vector<1x192xf32> to vector<1x128xf32>
    %95 = arith.addf %93, %94 : vector<1x128xf32>
    %96 = arith.negf %95 : vector<1x128xf32>
    %97 = math.exp %96 : vector<1x128xf32>
    %cst_34 = arith.constant 1.000000e+00 : f32
    %98 = vector.broadcast %cst_34 : f32 to vector<1x128xf32>
    %99 = arith.addf %98, %97 : vector<1x128xf32>
    %100 = arith.divf %98, %99 : vector<1x128xf32>
    %101 = vector.extract_strided_slice %100 {offsets = [0, 0], sizes = [1, 64], strides = [1, 1]} : vector<1x128xf32> to vector<1x64xf32>
    %102 = vector.extract_strided_slice %100 {offsets = [0, 64], sizes = [1, 64], strides = [1, 1]} : vector<1x128xf32> to vector<1x64xf32>
    %103 = vector.extract_strided_slice %90 {offsets = [0, 128], sizes = [1, 64], strides = [1, 1]} : vector<1x192xf32> to vector<1x64xf32>
    %104 = vector.extract_strided_slice %92 {offsets = [0, 128], sizes = [1, 64], strides = [1, 1]} : vector<1x192xf32> to vector<1x64xf32>
    %105 = arith.addf %104, %13 : vector<1x64xf32>
    %106 = arith.mulf %101, %105 : vector<1x64xf32>
    %107 = arith.addf %103, %106 : vector<1x64xf32>
    %108 = math.tanh %107 : vector<1x64xf32>
    %cst_35 = arith.constant 1.000000e+00 : f32
    %109 = vector.broadcast %cst_35 : f32 to vector<1x64xf32>
    %110 = arith.subf %109, %102 : vector<1x64xf32>
    %111 = arith.mulf %110, %108 : vector<1x64xf32>
    %112 = arith.mulf %102, %76 : vector<1x64xf32>
    %113 = arith.addf %111, %112 : vector<1x64xf32>
    %114 = vector.extract_strided_slice %113 {offsets = [0, 0], sizes = [1, 32], strides = [1, 1]} : vector<1x64xf32> to vector<1x32xf32>
    %115 = vector.extract_strided_slice %113 {offsets = [0, 32], sizes = [1, 32], strides = [1, 1]} : vector<1x64xf32> to vector<1x32xf32>
    %116 = arith.index_cast %c2_i32 : i32 to index
    %c0_36 = arith.constant 0 : index
    %117 = vector.load %arg7[%116, %c0_36] : memref<8x128xf32, #tpu.memory_space<vmem>>, vector<1x32xf32>
    tpu.vector_store %arg7[%116, %c0_36], %114 {strides = array<i32>} : memref<8x128xf32, #tpu.memory_space<vmem>>, vector<1x32xf32>,
    %c7_i32_37 = arith.constant 7 : i32
    %118 = arith.subi %c7_i32_37, %c2_i32 : i32
    %119 = arith.index_cast %118 : i32 to index
    %c32_38 = arith.constant 32 : index
    %120 = vector.load %arg7[%119, %c32_38] : memref<8x128xf32, #tpu.memory_space<vmem>>, vector<1x32xf32>
    tpu.vector_store %arg7[%119, %c32_38], %115 {strides = array<i32>} : memref<8x128xf32, #tpu.memory_space<vmem>>, vector<1x32xf32>,
    %c7_i32_39 = arith.constant 7 : i32
    %121 = arith.subi %c7_i32_39, %c2_i32 : i32
    %122 = arith.index_cast %121 : i32 to index
    %c64_40 = arith.constant 64 : index
    %123 = vector.load %arg7[%122, %c64_40] : memref<8x128xf32, #tpu.memory_space<vmem>>, vector<1x32xf32>
    tpu.vector_store %arg7[%122, %c64_40], %114 {strides = array<i32>} : memref<8x128xf32, #tpu.memory_space<vmem>>, vector<1x32xf32>,
    %124 = arith.index_cast %c2_i32 : i32 to index
    %c96_41 = arith.constant 96 : index
    %125 = vector.load %arg7[%124, %c96_41] : memref<8x128xf32, #tpu.memory_space<vmem>>, vector<1x32xf32>
    tpu.vector_store %arg7[%124, %c96_41], %115 {strides = array<i32>} : memref<8x128xf32, #tpu.memory_space<vmem>>, vector<1x32xf32>,
    %c3_i32 = arith.constant 3 : i32
    %126 = arith.index_cast %c3_i32 : i32 to index
    %c0_42 = arith.constant 0 : index
    %127 = vector.load %arg8[%126, %c0_42] : memref<8x192xf32, #tpu.memory_space<vmem>>, vector<1x192xf32>
    %128 = arith.truncf %113 : vector<1x64xf32> to vector<1x64xbf16>
    %cst_43 = arith.constant dense<0.000000e+00> : vector<1x192xf32>
    %129 = tpu.matmul %128, %11, %cst_43 {dimension_numbers = #tpu.dot_dimension_numbers<[1], [0], [0], [1], [0, 0, 1, 1], [], []>} : vector<1x64xbf16>, vector<64x192xbf16>, vector<1x192xf32> -> vector<1x192xf32>
    %130 = vector.extract_strided_slice %127 {offsets = [0, 0], sizes = [1, 128], strides = [1, 1]} : vector<1x192xf32> to vector<1x128xf32>
    %131 = vector.extract_strided_slice %129 {offsets = [0, 0], sizes = [1, 128], strides = [1, 1]} : vector<1x192xf32> to vector<1x128xf32>
    %132 = arith.addf %130, %131 : vector<1x128xf32>
    %133 = arith.negf %132 : vector<1x128xf32>
    %134 = math.exp %133 : vector<1x128xf32>
    %cst_44 = arith.constant 1.000000e+00 : f32
    %135 = vector.broadcast %cst_44 : f32 to vector<1x128xf32>
    %136 = arith.addf %135, %134 : vector<1x128xf32>
    %137 = arith.divf %135, %136 : vector<1x128xf32>
    %138 = vector.extract_strided_slice %137 {offsets = [0, 0], sizes = [1, 64], strides = [1, 1]} : vector<1x128xf32> to vector<1x64xf32>
    %139 = vector.extract_strided_slice %137 {offsets = [0, 64], sizes = [1, 64], strides = [1, 1]} : vector<1x128xf32> to vector<1x64xf32>
    %140 = vector.extract_strided_slice %127 {offsets = [0, 128], sizes = [1, 64], strides = [1, 1]} : vector<1x192xf32> to vector<1x64xf32>
    %141 = vector.extract_strided_slice %129 {offsets = [0, 128], sizes = [1, 64], strides = [1, 1]} : vector<1x192xf32> to vector<1x64xf32>
    %142 = arith.addf %141, %13 : vector<1x64xf32>
    %143 = arith.mulf %138, %142 : vector<1x64xf32>
    %144 = arith.addf %140, %143 : vector<1x64xf32>
    %145 = math.tanh %144 : vector<1x64xf32>
    %cst_45 = arith.constant 1.000000e+00 : f32
    %146 = vector.broadcast %cst_45 : f32 to vector<1x64xf32>
    %147 = arith.subf %146, %139 : vector<1x64xf32>
    %148 = arith.mulf %147, %145 : vector<1x64xf32>
    %149 = arith.mulf %139, %113 : vector<1x64xf32>
    %150 = arith.addf %148, %149 : vector<1x64xf32>
    %151 = vector.extract_strided_slice %150 {offsets = [0, 0], sizes = [1, 32], strides = [1, 1]} : vector<1x64xf32> to vector<1x32xf32>
    %152 = vector.extract_strided_slice %150 {offsets = [0, 32], sizes = [1, 32], strides = [1, 1]} : vector<1x64xf32> to vector<1x32xf32>
    %153 = arith.index_cast %c3_i32 : i32 to index
    %c0_46 = arith.constant 0 : index
    %154 = vector.load %arg7[%153, %c0_46] : memref<8x128xf32, #tpu.memory_space<vmem>>, vector<1x32xf32>
    tpu.vector_store %arg7[%153, %c0_46], %151 {strides = array<i32>} : memref<8x128xf32, #tpu.memory_space<vmem>>, vector<1x32xf32>,
    %c7_i32_47 = arith.constant 7 : i32
    %155 = arith.subi %c7_i32_47, %c3_i32 : i32
    %156 = arith.index_cast %155 : i32 to index
    %c32_48 = arith.constant 32 : index
    %157 = vector.load %arg7[%156, %c32_48] : memref<8x128xf32, #tpu.memory_space<vmem>>, vector<1x32xf32>
    tpu.vector_store %arg7[%156, %c32_48], %152 {strides = array<i32>} : memref<8x128xf32, #tpu.memory_space<vmem>>, vector<1x32xf32>,
    %c7_i32_49 = arith.constant 7 : i32
    %158 = arith.subi %c7_i32_49, %c3_i32 : i32
    %159 = arith.index_cast %158 : i32 to index
    %c64_50 = arith.constant 64 : index
    %160 = vector.load %arg7[%159, %c64_50] : memref<8x128xf32, #tpu.memory_space<vmem>>, vector<1x32xf32>
    tpu.vector_store %arg7[%159, %c64_50], %151 {strides = array<i32>} : memref<8x128xf32, #tpu.memory_space<vmem>>, vector<1x32xf32>,
    %161 = arith.index_cast %c3_i32 : i32 to index
    %c96_51 = arith.constant 96 : index
    %162 = vector.load %arg7[%161, %c96_51] : memref<8x128xf32, #tpu.memory_space<vmem>>, vector<1x32xf32>
    tpu.vector_store %arg7[%161, %c96_51], %152 {strides = array<i32>} : memref<8x128xf32, #tpu.memory_space<vmem>>, vector<1x32xf32>,
    %c4_i32 = arith.constant 4 : i32
    %163 = arith.index_cast %c4_i32 : i32 to index
    %c0_52 = arith.constant 0 : index
    %164 = vector.load %arg8[%163, %c0_52] : memref<8x192xf32, #tpu.memory_space<vmem>>, vector<1x192xf32>
    %165 = arith.truncf %150 : vector<1x64xf32> to vector<1x64xbf16>
    %cst_53 = arith.constant dense<0.000000e+00> : vector<1x192xf32>
    %166 = tpu.matmul %165, %11, %cst_53 {dimension_numbers = #tpu.dot_dimension_numbers<[1], [0], [0], [1], [0, 0, 1, 1], [], []>} : vector<1x64xbf16>, vector<64x192xbf16>, vector<1x192xf32> -> vector<1x192xf32>
    %167 = vector.extract_strided_slice %164 {offsets = [0, 0], sizes = [1, 128], strides = [1, 1]} : vector<1x192xf32> to vector<1x128xf32>
    %168 = vector.extract_strided_slice %166 {offsets = [0, 0], sizes = [1, 128], strides = [1, 1]} : vector<1x192xf32> to vector<1x128xf32>
    %169 = arith.addf %167, %168 : vector<1x128xf32>
    %170 = arith.negf %169 : vector<1x128xf32>
    %171 = math.exp %170 : vector<1x128xf32>
    %cst_54 = arith.constant 1.000000e+00 : f32
    %172 = vector.broadcast %cst_54 : f32 to vector<1x128xf32>
    %173 = arith.addf %172, %171 : vector<1x128xf32>
    %174 = arith.divf %172, %173 : vector<1x128xf32>
    %175 = vector.extract_strided_slice %174 {offsets = [0, 0], sizes = [1, 64], strides = [1, 1]} : vector<1x128xf32> to vector<1x64xf32>
    %176 = vector.extract_strided_slice %174 {offsets = [0, 64], sizes = [1, 64], strides = [1, 1]} : vector<1x128xf32> to vector<1x64xf32>
    %177 = vector.extract_strided_slice %164 {offsets = [0, 128], sizes = [1, 64], strides = [1, 1]} : vector<1x192xf32> to vector<1x64xf32>
    %178 = vector.extract_strided_slice %166 {offsets = [0, 128], sizes = [1, 64], strides = [1, 1]} : vector<1x192xf32> to vector<1x64xf32>
    %179 = arith.addf %178, %13 : vector<1x64xf32>
    %180 = arith.mulf %175, %179 : vector<1x64xf32>
    %181 = arith.addf %177, %180 : vector<1x64xf32>
    %182 = math.tanh %181 : vector<1x64xf32>
    %cst_55 = arith.constant 1.000000e+00 : f32
    %183 = vector.broadcast %cst_55 : f32 to vector<1x64xf32>
    %184 = arith.subf %183, %176 : vector<1x64xf32>
    %185 = arith.mulf %184, %182 : vector<1x64xf32>
    %186 = arith.mulf %176, %150 : vector<1x64xf32>
    %187 = arith.addf %185, %186 : vector<1x64xf32>
    %188 = vector.extract_strided_slice %187 {offsets = [0, 0], sizes = [1, 32], strides = [1, 1]} : vector<1x64xf32> to vector<1x32xf32>
    %189 = vector.extract_strided_slice %187 {offsets = [0, 32], sizes = [1, 32], strides = [1, 1]} : vector<1x64xf32> to vector<1x32xf32>
    %190 = arith.index_cast %c4_i32 : i32 to index
    %c0_56 = arith.constant 0 : index
    %191 = vector.load %arg7[%190, %c0_56] : memref<8x128xf32, #tpu.memory_space<vmem>>, vector<1x32xf32>
    tpu.vector_store %arg7[%190, %c0_56], %188 {strides = array<i32>} : memref<8x128xf32, #tpu.memory_space<vmem>>, vector<1x32xf32>,
    %c7_i32_57 = arith.constant 7 : i32
    %192 = arith.subi %c7_i32_57, %c4_i32 : i32
    %193 = arith.index_cast %192 : i32 to index
    %c32_58 = arith.constant 32 : index
    %194 = vector.load %arg7[%193, %c32_58] : memref<8x128xf32, #tpu.memory_space<vmem>>, vector<1x32xf32>
    tpu.vector_store %arg7[%193, %c32_58], %189 {strides = array<i32>} : memref<8x128xf32, #tpu.memory_space<vmem>>, vector<1x32xf32>,
    %c7_i32_59 = arith.constant 7 : i32
    %195 = arith.subi %c7_i32_59, %c4_i32 : i32
    %196 = arith.index_cast %195 : i32 to index
    %c64_60 = arith.constant 64 : index
    %197 = vector.load %arg7[%196, %c64_60] : memref<8x128xf32, #tpu.memory_space<vmem>>, vector<1x32xf32>
    tpu.vector_store %arg7[%196, %c64_60], %188 {strides = array<i32>} : memref<8x128xf32, #tpu.memory_space<vmem>>, vector<1x32xf32>,
    %198 = arith.index_cast %c4_i32 : i32 to index
    %c96_61 = arith.constant 96 : index
    %199 = vector.load %arg7[%198, %c96_61] : memref<8x128xf32, #tpu.memory_space<vmem>>, vector<1x32xf32>
    tpu.vector_store %arg7[%198, %c96_61], %189 {strides = array<i32>} : memref<8x128xf32, #tpu.memory_space<vmem>>, vector<1x32xf32>,
    %c5_i32 = arith.constant 5 : i32
    %200 = arith.index_cast %c5_i32 : i32 to index
    %c0_62 = arith.constant 0 : index
    %201 = vector.load %arg8[%200, %c0_62] : memref<8x192xf32, #tpu.memory_space<vmem>>, vector<1x192xf32>
    %202 = arith.truncf %187 : vector<1x64xf32> to vector<1x64xbf16>
    %cst_63 = arith.constant dense<0.000000e+00> : vector<1x192xf32>
    %203 = tpu.matmul %202, %11, %cst_63 {dimension_numbers = #tpu.dot_dimension_numbers<[1], [0], [0], [1], [0, 0, 1, 1], [], []>} : vector<1x64xbf16>, vector<64x192xbf16>, vector<1x192xf32> -> vector<1x192xf32>
    %204 = vector.extract_strided_slice %201 {offsets = [0, 0], sizes = [1, 128], strides = [1, 1]} : vector<1x192xf32> to vector<1x128xf32>
    %205 = vector.extract_strided_slice %203 {offsets = [0, 0], sizes = [1, 128], strides = [1, 1]} : vector<1x192xf32> to vector<1x128xf32>
    %206 = arith.addf %204, %205 : vector<1x128xf32>
    %207 = arith.negf %206 : vector<1x128xf32>
    %208 = math.exp %207 : vector<1x128xf32>
    %cst_64 = arith.constant 1.000000e+00 : f32
    %209 = vector.broadcast %cst_64 : f32 to vector<1x128xf32>
    %210 = arith.addf %209, %208 : vector<1x128xf32>
    %211 = arith.divf %209, %210 : vector<1x128xf32>
    %212 = vector.extract_strided_slice %211 {offsets = [0, 0], sizes = [1, 64], strides = [1, 1]} : vector<1x128xf32> to vector<1x64xf32>
    %213 = vector.extract_strided_slice %211 {offsets = [0, 64], sizes = [1, 64], strides = [1, 1]} : vector<1x128xf32> to vector<1x64xf32>
    %214 = vector.extract_strided_slice %201 {offsets = [0, 128], sizes = [1, 64], strides = [1, 1]} : vector<1x192xf32> to vector<1x64xf32>
    %215 = vector.extract_strided_slice %203 {offsets = [0, 128], sizes = [1, 64], strides = [1, 1]} : vector<1x192xf32> to vector<1x64xf32>
    %216 = arith.addf %215, %13 : vector<1x64xf32>
    %217 = arith.mulf %212, %216 : vector<1x64xf32>
    %218 = arith.addf %214, %217 : vector<1x64xf32>
    %219 = math.tanh %218 : vector<1x64xf32>
    %cst_65 = arith.constant 1.000000e+00 : f32
    %220 = vector.broadcast %cst_65 : f32 to vector<1x64xf32>
    %221 = arith.subf %220, %213 : vector<1x64xf32>
    %222 = arith.mulf %221, %219 : vector<1x64xf32>
    %223 = arith.mulf %213, %187 : vector<1x64xf32>
    %224 = arith.addf %222, %223 : vector<1x64xf32>
    %225 = vector.extract_strided_slice %224 {offsets = [0, 0], sizes = [1, 32], strides = [1, 1]} : vector<1x64xf32> to vector<1x32xf32>
    %226 = vector.extract_strided_slice %224 {offsets = [0, 32], sizes = [1, 32], strides = [1, 1]} : vector<1x64xf32> to vector<1x32xf32>
    %227 = arith.index_cast %c5_i32 : i32 to index
    %c0_66 = arith.constant 0 : index
    %228 = vector.load %arg7[%227, %c0_66] : memref<8x128xf32, #tpu.memory_space<vmem>>, vector<1x32xf32>
    tpu.vector_store %arg7[%227, %c0_66], %225 {strides = array<i32>} : memref<8x128xf32, #tpu.memory_space<vmem>>, vector<1x32xf32>,
    %c7_i32_67 = arith.constant 7 : i32
    %229 = arith.subi %c7_i32_67, %c5_i32 : i32
    %230 = arith.index_cast %229 : i32 to index
    %c32_68 = arith.constant 32 : index
    %231 = vector.load %arg7[%230, %c32_68] : memref<8x128xf32, #tpu.memory_space<vmem>>, vector<1x32xf32>
    tpu.vector_store %arg7[%230, %c32_68], %226 {strides = array<i32>} : memref<8x128xf32, #tpu.memory_space<vmem>>, vector<1x32xf32>,
    %c7_i32_69 = arith.constant 7 : i32
    %232 = arith.subi %c7_i32_69, %c5_i32 : i32
    %233 = arith.index_cast %232 : i32 to index
    %c64_70 = arith.constant 64 : index
    %234 = vector.load %arg7[%233, %c64_70] : memref<8x128xf32, #tpu.memory_space<vmem>>, vector<1x32xf32>
    tpu.vector_store %arg7[%233, %c64_70], %225 {strides = array<i32>} : memref<8x128xf32, #tpu.memory_space<vmem>>, vector<1x32xf32>,
    %235 = arith.index_cast %c5_i32 : i32 to index
    %c96_71 = arith.constant 96 : index
    %236 = vector.load %arg7[%235, %c96_71] : memref<8x128xf32, #tpu.memory_space<vmem>>, vector<1x32xf32>
    tpu.vector_store %arg7[%235, %c96_71], %226 {strides = array<i32>} : memref<8x128xf32, #tpu.memory_space<vmem>>, vector<1x32xf32>,
    %c6_i32 = arith.constant 6 : i32
    %237 = arith.index_cast %c6_i32 : i32 to index
    %c0_72 = arith.constant 0 : index
    %238 = vector.load %arg8[%237, %c0_72] : memref<8x192xf32, #tpu.memory_space<vmem>>, vector<1x192xf32>
    %239 = arith.truncf %224 : vector<1x64xf32> to vector<1x64xbf16>
    %cst_73 = arith.constant dense<0.000000e+00> : vector<1x192xf32>
    %240 = tpu.matmul %239, %11, %cst_73 {dimension_numbers = #tpu.dot_dimension_numbers<[1], [0], [0], [1], [0, 0, 1, 1], [], []>} : vector<1x64xbf16>, vector<64x192xbf16>, vector<1x192xf32> -> vector<1x192xf32>
    %241 = vector.extract_strided_slice %238 {offsets = [0, 0], sizes = [1, 128], strides = [1, 1]} : vector<1x192xf32> to vector<1x128xf32>
    %242 = vector.extract_strided_slice %240 {offsets = [0, 0], sizes = [1, 128], strides = [1, 1]} : vector<1x192xf32> to vector<1x128xf32>
    %243 = arith.addf %241, %242 : vector<1x128xf32>
    %244 = arith.negf %243 : vector<1x128xf32>
    %245 = math.exp %244 : vector<1x128xf32>
    %cst_74 = arith.constant 1.000000e+00 : f32
    %246 = vector.broadcast %cst_74 : f32 to vector<1x128xf32>
    %247 = arith.addf %246, %245 : vector<1x128xf32>
    %248 = arith.divf %246, %247 : vector<1x128xf32>
    %249 = vector.extract_strided_slice %248 {offsets = [0, 0], sizes = [1, 64], strides = [1, 1]} : vector<1x128xf32> to vector<1x64xf32>
    %250 = vector.extract_strided_slice %248 {offsets = [0, 64], sizes = [1, 64], strides = [1, 1]} : vector<1x128xf32> to vector<1x64xf32>
    %251 = vector.extract_strided_slice %238 {offsets = [0, 128], sizes = [1, 64], strides = [1, 1]} : vector<1x192xf32> to vector<1x64xf32>
    %252 = vector.extract_strided_slice %240 {offsets = [0, 128], sizes = [1, 64], strides = [1, 1]} : vector<1x192xf32> to vector<1x64xf32>
    %253 = arith.addf %252, %13 : vector<1x64xf32>
    %254 = arith.mulf %249, %253 : vector<1x64xf32>
    %255 = arith.addf %251, %254 : vector<1x64xf32>
    %256 = math.tanh %255 : vector<1x64xf32>
    %cst_75 = arith.constant 1.000000e+00 : f32
    %257 = vector.broadcast %cst_75 : f32 to vector<1x64xf32>
    %258 = arith.subf %257, %250 : vector<1x64xf32>
    %259 = arith.mulf %258, %256 : vector<1x64xf32>
    %260 = arith.mulf %250, %224 : vector<1x64xf32>
    %261 = arith.addf %259, %260 : vector<1x64xf32>
    %262 = vector.extract_strided_slice %261 {offsets = [0, 0], sizes = [1, 32], strides = [1, 1]} : vector<1x64xf32> to vector<1x32xf32>
    %263 = vector.extract_strided_slice %261 {offsets = [0, 32], sizes = [1, 32], strides = [1, 1]} : vector<1x64xf32> to vector<1x32xf32>
    %264 = arith.index_cast %c6_i32 : i32 to index
    %c0_76 = arith.constant 0 : index
    %265 = vector.load %arg7[%264, %c0_76] : memref<8x128xf32, #tpu.memory_space<vmem>>, vector<1x32xf32>
    tpu.vector_store %arg7[%264, %c0_76], %262 {strides = array<i32>} : memref<8x128xf32, #tpu.memory_space<vmem>>, vector<1x32xf32>,
    %c7_i32_77 = arith.constant 7 : i32
    %266 = arith.subi %c7_i32_77, %c6_i32 : i32
    %267 = arith.index_cast %266 : i32 to index
    %c32_78 = arith.constant 32 : index
    %268 = vector.load %arg7[%267, %c32_78] : memref<8x128xf32, #tpu.memory_space<vmem>>, vector<1x32xf32>
    tpu.vector_store %arg7[%267, %c32_78], %263 {strides = array<i32>} : memref<8x128xf32, #tpu.memory_space<vmem>>, vector<1x32xf32>,
    %c7_i32_79 = arith.constant 7 : i32
    %269 = arith.subi %c7_i32_79, %c6_i32 : i32
    %270 = arith.index_cast %269 : i32 to index
    %c64_80 = arith.constant 64 : index
    %271 = vector.load %arg7[%270, %c64_80] : memref<8x128xf32, #tpu.memory_space<vmem>>, vector<1x32xf32>
    tpu.vector_store %arg7[%270, %c64_80], %262 {strides = array<i32>} : memref<8x128xf32, #tpu.memory_space<vmem>>, vector<1x32xf32>,
    %272 = arith.index_cast %c6_i32 : i32 to index
    %c96_81 = arith.constant 96 : index
    %273 = vector.load %arg7[%272, %c96_81] : memref<8x128xf32, #tpu.memory_space<vmem>>, vector<1x32xf32>
    tpu.vector_store %arg7[%272, %c96_81], %263 {strides = array<i32>} : memref<8x128xf32, #tpu.memory_space<vmem>>, vector<1x32xf32>,
    %c7_i32_82 = arith.constant 7 : i32
    %274 = arith.index_cast %c7_i32_82 : i32 to index
    %c0_83 = arith.constant 0 : index
    %275 = vector.load %arg8[%274, %c0_83] : memref<8x192xf32, #tpu.memory_space<vmem>>, vector<1x192xf32>
    %276 = arith.truncf %261 : vector<1x64xf32> to vector<1x64xbf16>
    %cst_84 = arith.constant dense<0.000000e+00> : vector<1x192xf32>
    %277 = tpu.matmul %276, %11, %cst_84 {dimension_numbers = #tpu.dot_dimension_numbers<[1], [0], [0], [1], [0, 0, 1, 1], [], []>} : vector<1x64xbf16>, vector<64x192xbf16>, vector<1x192xf32> -> vector<1x192xf32>
    %278 = vector.extract_strided_slice %275 {offsets = [0, 0], sizes = [1, 128], strides = [1, 1]} : vector<1x192xf32> to vector<1x128xf32>
    %279 = vector.extract_strided_slice %277 {offsets = [0, 0], sizes = [1, 128], strides = [1, 1]} : vector<1x192xf32> to vector<1x128xf32>
    %280 = arith.addf %278, %279 : vector<1x128xf32>
    %281 = arith.negf %280 : vector<1x128xf32>
    %282 = math.exp %281 : vector<1x128xf32>
    %cst_85 = arith.constant 1.000000e+00 : f32
    %283 = vector.broadcast %cst_85 : f32 to vector<1x128xf32>
    %284 = arith.addf %283, %282 : vector<1x128xf32>
    %285 = arith.divf %283, %284 : vector<1x128xf32>
    %286 = vector.extract_strided_slice %285 {offsets = [0, 0], sizes = [1, 64], strides = [1, 1]} : vector<1x128xf32> to vector<1x64xf32>
    %287 = vector.extract_strided_slice %285 {offsets = [0, 64], sizes = [1, 64], strides = [1, 1]} : vector<1x128xf32> to vector<1x64xf32>
    %288 = vector.extract_strided_slice %275 {offsets = [0, 128], sizes = [1, 64], strides = [1, 1]} : vector<1x192xf32> to vector<1x64xf32>
    %289 = vector.extract_strided_slice %277 {offsets = [0, 128], sizes = [1, 64], strides = [1, 1]} : vector<1x192xf32> to vector<1x64xf32>
    %290 = arith.addf %289, %13 : vector<1x64xf32>
    %291 = arith.mulf %286, %290 : vector<1x64xf32>
    %292 = arith.addf %288, %291 : vector<1x64xf32>
    %293 = math.tanh %292 : vector<1x64xf32>
    %cst_86 = arith.constant 1.000000e+00 : f32
    %294 = vector.broadcast %cst_86 : f32 to vector<1x64xf32>
    %295 = arith.subf %294, %287 : vector<1x64xf32>
    %296 = arith.mulf %295, %293 : vector<1x64xf32>
    %297 = arith.mulf %287, %261 : vector<1x64xf32>
    %298 = arith.addf %296, %297 : vector<1x64xf32>
    %299 = vector.extract_strided_slice %298 {offsets = [0, 0], sizes = [1, 32], strides = [1, 1]} : vector<1x64xf32> to vector<1x32xf32>
    %300 = vector.extract_strided_slice %298 {offsets = [0, 32], sizes = [1, 32], strides = [1, 1]} : vector<1x64xf32> to vector<1x32xf32>
    %301 = arith.index_cast %c7_i32_82 : i32 to index
    %c0_87 = arith.constant 0 : index
    %302 = vector.load %arg7[%301, %c0_87] : memref<8x128xf32, #tpu.memory_space<vmem>>, vector<1x32xf32>
    tpu.vector_store %arg7[%301, %c0_87], %299 {strides = array<i32>} : memref<8x128xf32, #tpu.memory_space<vmem>>, vector<1x32xf32>,
    %c7_i32_88 = arith.constant 7 : i32
    %303 = arith.subi %c7_i32_88, %c7_i32_82 : i32
    %304 = arith.index_cast %303 : i32 to index
    %c32_89 = arith.constant 32 : index
    %305 = vector.load %arg7[%304, %c32_89] : memref<8x128xf32, #tpu.memory_space<vmem>>, vector<1x32xf32>
    tpu.vector_store %arg7[%304, %c32_89], %300 {strides = array<i32>} : memref<8x128xf32, #tpu.memory_space<vmem>>, vector<1x32xf32>,
    %c7_i32_90 = arith.constant 7 : i32
    %306 = arith.subi %c7_i32_90, %c7_i32_82 : i32
    %307 = arith.index_cast %306 : i32 to index
    %c64_91 = arith.constant 64 : index
    %308 = vector.load %arg7[%307, %c64_91] : memref<8x128xf32, #tpu.memory_space<vmem>>, vector<1x32xf32>
    tpu.vector_store %arg7[%307, %c64_91], %299 {strides = array<i32>} : memref<8x128xf32, #tpu.memory_space<vmem>>, vector<1x32xf32>,
    %309 = arith.index_cast %c7_i32_82 : i32 to index
    %c96_92 = arith.constant 96 : index
    %310 = vector.load %arg7[%309, %c96_92] : memref<8x128xf32, #tpu.memory_space<vmem>>, vector<1x32xf32>
    tpu.vector_store %arg7[%309, %c96_92], %300 {strides = array<i32>} : memref<8x128xf32, #tpu.memory_space<vmem>>, vector<1x32xf32>,
    %c8_i32 = arith.constant 8 : i32
    %311 = vector.extract_strided_slice %298 {offsets = [0, 0], sizes = [1, 32], strides = [1, 1]} : vector<1x64xf32> to vector<1x32xf32>
    %312 = vector.extract_strided_slice %298 {offsets = [0, 32], sizes = [1, 32], strides = [1, 1]} : vector<1x64xf32> to vector<1x32xf32>
    %313 = arith.addf %311, %312 : vector<1x32xf32>
    %c0_93 = arith.constant 0 : index
    %c0_94 = arith.constant 0 : index
    %314 = vector.load %arg6[%c0_93, %c0_94] : memref<2x32xf32, #tpu.memory_space<vmem>>, vector<1x32xf32>
    tpu.vector_store %arg6[%c0_93, %c0_94], %313 {strides = array<i32>} : memref<2x32xf32, #tpu.memory_space<vmem>>, vector<1x32xf32>,
    %c0_95 = arith.constant 0 : index
    %c0_96 = arith.constant 0 : index
    %315 = vector.load %arg7[%c0_95, %c0_96] : memref<8x128xf32, #tpu.memory_space<vmem>>, vector<8x128xf32>
    %316 = arith.truncf %315 : vector<8x128xf32> to vector<8x128xbf16>
    %c1 = arith.constant 1 : index
    %c0_97 = arith.constant 0 : index
    %c0_98 = arith.constant 0 : index
    %317 = vector.load %arg1[%c1, %c0_97, %c0_98] : memref<2x128x192xbf16, #tpu.memory_space<vmem>>, vector<1x128x192xbf16>
    %318 = vector.shape_cast %317 : vector<1x128x192xbf16> to vector<128x192xbf16>
    %cst_99 = arith.constant dense<0.000000e+00> : vector<8x192xf32>
    %319 = tpu.matmul %316, %318, %cst_99 {dimension_numbers = #tpu.dot_dimension_numbers<[1], [0], [0], [1], [0, 0, 1, 1], [], []>} : vector<8x128xbf16>, vector<128x192xbf16>, vector<8x192xf32> -> vector<8x192xf32>
    %c1_100 = arith.constant 1 : index
    %c0_101 = arith.constant 0 : index
    %c0_102 = arith.constant 0 : index
    %320 = vector.load %arg2[%c1_100, %c0_101, %c0_102] : memref<2x1x192xf32, #tpu.memory_space<vmem>>, vector<1x1x192xf32>
    %321 = vector.shape_cast %320 : vector<1x1x192xf32> to vector<1x192xf32>
    %322 = vector.broadcast %321 : vector<1x192xf32> to vector<8x192xf32>
    %323 = arith.addf %319, %322 : vector<8x192xf32>
    %c0_103 = arith.constant 0 : index
    %c0_104 = arith.constant 0 : index
    %324 = vector.load %arg8[%c0_103, %c0_104] : memref<8x192xf32, #tpu.memory_space<vmem>>, vector<8x192xf32>
    tpu.vector_store %arg8[%c0_103, %c0_104], %323 {strides = array<i32>} : memref<8x192xf32, #tpu.memory_space<vmem>>, vector<8x192xf32>,
    %c1_105 = arith.constant 1 : index
    %c0_106 = arith.constant 0 : index
    %c0_107 = arith.constant 0 : index
    %325 = vector.load %arg3[%c1_105, %c0_106, %c0_107] : memref<2x64x192xbf16, #tpu.memory_space<vmem>>, vector<1x64x192xbf16>
    %326 = vector.shape_cast %325 : vector<1x64x192xbf16> to vector<64x192xbf16>
    %c1_108 = arith.constant 1 : index
    %c0_109 = arith.constant 0 : index
    %c0_110 = arith.constant 0 : index
    %327 = vector.load %arg4[%c1_108, %c0_109, %c0_110] : memref<2x1x64xf32, #tpu.memory_space<vmem>>, vector<1x1x64xf32>
    %328 = vector.shape_cast %327 : vector<1x1x64xf32> to vector<1x64xf32>
    %cst_111 = arith.constant 0.000000e+00 : f32
    %329 = vector.broadcast %cst_111 : f32 to vector<1x64xf32>
    %c0_i32_112 = arith.constant 0 : i32
    %330 = arith.index_cast %c0_i32_112 : i32 to index
    %c0_113 = arith.constant 0 : index
    %331 = vector.load %arg8[%330, %c0_113] : memref<8x192xf32, #tpu.memory_space<vmem>>, vector<1x192xf32>
    %332 = arith.truncf %329 : vector<1x64xf32> to vector<1x64xbf16>
    %cst_114 = arith.constant dense<0.000000e+00> : vector<1x192xf32>
    %333 = tpu.matmul %332, %326, %cst_114 {dimension_numbers = #tpu.dot_dimension_numbers<[1], [0], [0], [1], [0, 0, 1, 1], [], []>} : vector<1x64xbf16>, vector<64x192xbf16>, vector<1x192xf32> -> vector<1x192xf32>
    %334 = vector.extract_strided_slice %331 {offsets = [0, 0], sizes = [1, 128], strides = [1, 1]} : vector<1x192xf32> to vector<1x128xf32>
    %335 = vector.extract_strided_slice %333 {offsets = [0, 0], sizes = [1, 128], strides = [1, 1]} : vector<1x192xf32> to vector<1x128xf32>
    %336 = arith.addf %334, %335 : vector<1x128xf32>
    %337 = arith.negf %336 : vector<1x128xf32>
    %338 = math.exp %337 : vector<1x128xf32>
    %cst_115 = arith.constant 1.000000e+00 : f32
    %339 = vector.broadcast %cst_115 : f32 to vector<1x128xf32>
    %340 = arith.addf %339, %338 : vector<1x128xf32>
    %341 = arith.divf %339, %340 : vector<1x128xf32>
    %342 = vector.extract_strided_slice %341 {offsets = [0, 0], sizes = [1, 64], strides = [1, 1]} : vector<1x128xf32> to vector<1x64xf32>
    %343 = vector.extract_strided_slice %341 {offsets = [0, 64], sizes = [1, 64], strides = [1, 1]} : vector<1x128xf32> to vector<1x64xf32>
    %344 = vector.extract_strided_slice %331 {offsets = [0, 128], sizes = [1, 64], strides = [1, 1]} : vector<1x192xf32> to vector<1x64xf32>
    %345 = vector.extract_strided_slice %333 {offsets = [0, 128], sizes = [1, 64], strides = [1, 1]} : vector<1x192xf32> to vector<1x64xf32>
    %346 = arith.addf %345, %328 : vector<1x64xf32>
    %347 = arith.mulf %342, %346 : vector<1x64xf32>
    %348 = arith.addf %344, %347 : vector<1x64xf32>
    %349 = math.tanh %348 : vector<1x64xf32>
    %cst_116 = arith.constant 1.000000e+00 : f32
    %350 = vector.broadcast %cst_116 : f32 to vector<1x64xf32>
    %351 = arith.subf %350, %343 : vector<1x64xf32>
    %352 = arith.mulf %351, %349 : vector<1x64xf32>
    %353 = arith.mulf %343, %329 : vector<1x64xf32>
    %354 = arith.addf %352, %353 : vector<1x64xf32>
    %355 = vector.extract_strided_slice %354 {offsets = [0, 0], sizes = [1, 32], strides = [1, 1]} : vector<1x64xf32> to vector<1x32xf32>
    %356 = vector.extract_strided_slice %354 {offsets = [0, 32], sizes = [1, 32], strides = [1, 1]} : vector<1x64xf32> to vector<1x32xf32>
    %357 = arith.index_cast %c0_i32_112 : i32 to index
    %c0_117 = arith.constant 0 : index
    %358 = vector.load %arg7[%357, %c0_117] : memref<8x128xf32, #tpu.memory_space<vmem>>, vector<1x32xf32>
    tpu.vector_store %arg7[%357, %c0_117], %355 {strides = array<i32>} : memref<8x128xf32, #tpu.memory_space<vmem>>, vector<1x32xf32>,
    %c7_i32_118 = arith.constant 7 : i32
    %359 = arith.subi %c7_i32_118, %c0_i32_112 : i32
    %360 = arith.index_cast %359 : i32 to index
    %c32_119 = arith.constant 32 : index
    %361 = vector.load %arg7[%360, %c32_119] : memref<8x128xf32, #tpu.memory_space<vmem>>, vector<1x32xf32>
    tpu.vector_store %arg7[%360, %c32_119], %356 {strides = array<i32>} : memref<8x128xf32, #tpu.memory_space<vmem>>, vector<1x32xf32>,
    %c1_i32_120 = arith.constant 1 : i32
    %362 = arith.index_cast %c1_i32_120 : i32 to index
    %c0_121 = arith.constant 0 : index
    %363 = vector.load %arg8[%362, %c0_121] : memref<8x192xf32, #tpu.memory_space<vmem>>, vector<1x192xf32>
    %364 = arith.truncf %354 : vector<1x64xf32> to vector<1x64xbf16>
    %cst_122 = arith.constant dense<0.000000e+00> : vector<1x192xf32>
    %365 = tpu.matmul %364, %326, %cst_122 {dimension_numbers = #tpu.dot_dimension_numbers<[1], [0], [0], [1], [0, 0, 1, 1], [], []>} : vector<1x64xbf16>, vector<64x192xbf16>, vector<1x192xf32> -> vector<1x192xf32>
    %366 = vector.extract_strided_slice %363 {offsets = [0, 0], sizes = [1, 128], strides = [1, 1]} : vector<1x192xf32> to vector<1x128xf32>
    %367 = vector.extract_strided_slice %365 {offsets = [0, 0], sizes = [1, 128], strides = [1, 1]} : vector<1x192xf32> to vector<1x128xf32>
    %368 = arith.addf %366, %367 : vector<1x128xf32>
    %369 = arith.negf %368 : vector<1x128xf32>
    %370 = math.exp %369 : vector<1x128xf32>
    %cst_123 = arith.constant 1.000000e+00 : f32
    %371 = vector.broadcast %cst_123 : f32 to vector<1x128xf32>
    %372 = arith.addf %371, %370 : vector<1x128xf32>
    %373 = arith.divf %371, %372 : vector<1x128xf32>
    %374 = vector.extract_strided_slice %373 {offsets = [0, 0], sizes = [1, 64], strides = [1, 1]} : vector<1x128xf32> to vector<1x64xf32>
    %375 = vector.extract_strided_slice %373 {offsets = [0, 64], sizes = [1, 64], strides = [1, 1]} : vector<1x128xf32> to vector<1x64xf32>
    %376 = vector.extract_strided_slice %363 {offsets = [0, 128], sizes = [1, 64], strides = [1, 1]} : vector<1x192xf32> to vector<1x64xf32>
    %377 = vector.extract_strided_slice %365 {offsets = [0, 128], sizes = [1, 64], strides = [1, 1]} : vector<1x192xf32> to vector<1x64xf32>
    %378 = arith.addf %377, %328 : vector<1x64xf32>
    %379 = arith.mulf %374, %378 : vector<1x64xf32>
    %380 = arith.addf %376, %379 : vector<1x64xf32>
    %381 = math.tanh %380 : vector<1x64xf32>
    %cst_124 = arith.constant 1.000000e+00 : f32
    %382 = vector.broadcast %cst_124 : f32 to vector<1x64xf32>
    %383 = arith.subf %382, %375 : vector<1x64xf32>
    %384 = arith.mulf %383, %381 : vector<1x64xf32>
    %385 = arith.mulf %375, %354 : vector<1x64xf32>
    %386 = arith.addf %384, %385 : vector<1x64xf32>
    %387 = vector.extract_strided_slice %386 {offsets = [0, 0], sizes = [1, 32], strides = [1, 1]} : vector<1x64xf32> to vector<1x32xf32>
    %388 = vector.extract_strided_slice %386 {offsets = [0, 32], sizes = [1, 32], strides = [1, 1]} : vector<1x64xf32> to vector<1x32xf32>
    %389 = arith.index_cast %c1_i32_120 : i32 to index
    %c0_125 = arith.constant 0 : index
    %390 = vector.load %arg7[%389, %c0_125] : memref<8x128xf32, #tpu.memory_space<vmem>>, vector<1x32xf32>
    tpu.vector_store %arg7[%389, %c0_125], %387 {strides = array<i32>} : memref<8x128xf32, #tpu.memory_space<vmem>>, vector<1x32xf32>,
    %c7_i32_126 = arith.constant 7 : i32
    %391 = arith.subi %c7_i32_126, %c1_i32_120 : i32
    %392 = arith.index_cast %391 : i32 to index
    %c32_127 = arith.constant 32 : index
    %393 = vector.load %arg7[%392, %c32_127] : memref<8x128xf32, #tpu.memory_space<vmem>>, vector<1x32xf32>
    tpu.vector_store %arg7[%392, %c32_127], %388 {strides = array<i32>} : memref<8x128xf32, #tpu.memory_space<vmem>>, vector<1x32xf32>,
    %c2_i32_128 = arith.constant 2 : i32
    %394 = arith.index_cast %c2_i32_128 : i32 to index
    %c0_129 = arith.constant 0 : index
    %395 = vector.load %arg8[%394, %c0_129] : memref<8x192xf32, #tpu.memory_space<vmem>>, vector<1x192xf32>
    %396 = arith.truncf %386 : vector<1x64xf32> to vector<1x64xbf16>
    %cst_130 = arith.constant dense<0.000000e+00> : vector<1x192xf32>
    %397 = tpu.matmul %396, %326, %cst_130 {dimension_numbers = #tpu.dot_dimension_numbers<[1], [0], [0], [1], [0, 0, 1, 1], [], []>} : vector<1x64xbf16>, vector<64x192xbf16>, vector<1x192xf32> -> vector<1x192xf32>
    %398 = vector.extract_strided_slice %395 {offsets = [0, 0], sizes = [1, 128], strides = [1, 1]} : vector<1x192xf32> to vector<1x128xf32>
    %399 = vector.extract_strided_slice %397 {offsets = [0, 0], sizes = [1, 128], strides = [1, 1]} : vector<1x192xf32> to vector<1x128xf32>
    %400 = arith.addf %398, %399 : vector<1x128xf32>
    %401 = arith.negf %400 : vector<1x128xf32>
    %402 = math.exp %401 : vector<1x128xf32>
    %cst_131 = arith.constant 1.000000e+00 : f32
    %403 = vector.broadcast %cst_131 : f32 to vector<1x128xf32>
    %404 = arith.addf %403, %402 : vector<1x128xf32>
    %405 = arith.divf %403, %404 : vector<1x128xf32>
    %406 = vector.extract_strided_slice %405 {offsets = [0, 0], sizes = [1, 64], strides = [1, 1]} : vector<1x128xf32> to vector<1x64xf32>
    %407 = vector.extract_strided_slice %405 {offsets = [0, 64], sizes = [1, 64], strides = [1, 1]} : vector<1x128xf32> to vector<1x64xf32>
    %408 = vector.extract_strided_slice %395 {offsets = [0, 128], sizes = [1, 64], strides = [1, 1]} : vector<1x192xf32> to vector<1x64xf32>
    %409 = vector.extract_strided_slice %397 {offsets = [0, 128], sizes = [1, 64], strides = [1, 1]} : vector<1x192xf32> to vector<1x64xf32>
    %410 = arith.addf %409, %328 : vector<1x64xf32>
    %411 = arith.mulf %406, %410 : vector<1x64xf32>
    %412 = arith.addf %408, %411 : vector<1x64xf32>
    %413 = math.tanh %412 : vector<1x64xf32>
    %cst_132 = arith.constant 1.000000e+00 : f32
    %414 = vector.broadcast %cst_132 : f32 to vector<1x64xf32>
    %415 = arith.subf %414, %407 : vector<1x64xf32>
    %416 = arith.mulf %415, %413 : vector<1x64xf32>
    %417 = arith.mulf %407, %386 : vector<1x64xf32>
    %418 = arith.addf %416, %417 : vector<1x64xf32>
    %419 = vector.extract_strided_slice %418 {offsets = [0, 0], sizes = [1, 32], strides = [1, 1]} : vector<1x64xf32> to vector<1x32xf32>
    %420 = vector.extract_strided_slice %418 {offsets = [0, 32], sizes = [1, 32], strides = [1, 1]} : vector<1x64xf32> to vector<1x32xf32>
    %421 = arith.index_cast %c2_i32_128 : i32 to index
    %c0_133 = arith.constant 0 : index
    %422 = vector.load %arg7[%421, %c0_133] : memref<8x128xf32, #tpu.memory_space<vmem>>, vector<1x32xf32>
    tpu.vector_store %arg7[%421, %c0_133], %419 {strides = array<i32>} : memref<8x128xf32, #tpu.memory_space<vmem>>, vector<1x32xf32>,
    %c7_i32_134 = arith.constant 7 : i32
    %423 = arith.subi %c7_i32_134, %c2_i32_128 : i32
    %424 = arith.index_cast %423 : i32 to index
    %c32_135 = arith.constant 32 : index
    %425 = vector.load %arg7[%424, %c32_135] : memref<8x128xf32, #tpu.memory_space<vmem>>, vector<1x32xf32>
    tpu.vector_store %arg7[%424, %c32_135], %420 {strides = array<i32>} : memref<8x128xf32, #tpu.memory_space<vmem>>, vector<1x32xf32>,
    %c3_i32_136 = arith.constant 3 : i32
    %426 = arith.index_cast %c3_i32_136 : i32 to index
    %c0_137 = arith.constant 0 : index
    %427 = vector.load %arg8[%426, %c0_137] : memref<8x192xf32, #tpu.memory_space<vmem>>, vector<1x192xf32>
    %428 = arith.truncf %418 : vector<1x64xf32> to vector<1x64xbf16>
    %cst_138 = arith.constant dense<0.000000e+00> : vector<1x192xf32>
    %429 = tpu.matmul %428, %326, %cst_138 {dimension_numbers = #tpu.dot_dimension_numbers<[1], [0], [0], [1], [0, 0, 1, 1], [], []>} : vector<1x64xbf16>, vector<64x192xbf16>, vector<1x192xf32> -> vector<1x192xf32>
    %430 = vector.extract_strided_slice %427 {offsets = [0, 0], sizes = [1, 128], strides = [1, 1]} : vector<1x192xf32> to vector<1x128xf32>
    %431 = vector.extract_strided_slice %429 {offsets = [0, 0], sizes = [1, 128], strides = [1, 1]} : vector<1x192xf32> to vector<1x128xf32>
    %432 = arith.addf %430, %431 : vector<1x128xf32>
    %433 = arith.negf %432 : vector<1x128xf32>
    %434 = math.exp %433 : vector<1x128xf32>
    %cst_139 = arith.constant 1.000000e+00 : f32
    %435 = vector.broadcast %cst_139 : f32 to vector<1x128xf32>
    %436 = arith.addf %435, %434 : vector<1x128xf32>
    %437 = arith.divf %435, %436 : vector<1x128xf32>
    %438 = vector.extract_strided_slice %437 {offsets = [0, 0], sizes = [1, 64], strides = [1, 1]} : vector<1x128xf32> to vector<1x64xf32>
    %439 = vector.extract_strided_slice %437 {offsets = [0, 64], sizes = [1, 64], strides = [1, 1]} : vector<1x128xf32> to vector<1x64xf32>
    %440 = vector.extract_strided_slice %427 {offsets = [0, 128], sizes = [1, 64], strides = [1, 1]} : vector<1x192xf32> to vector<1x64xf32>
    %441 = vector.extract_strided_slice %429 {offsets = [0, 128], sizes = [1, 64], strides = [1, 1]} : vector<1x192xf32> to vector<1x64xf32>
    %442 = arith.addf %441, %328 : vector<1x64xf32>
    %443 = arith.mulf %438, %442 : vector<1x64xf32>
    %444 = arith.addf %440, %443 : vector<1x64xf32>
    %445 = math.tanh %444 : vector<1x64xf32>
    %cst_140 = arith.constant 1.000000e+00 : f32
    %446 = vector.broadcast %cst_140 : f32 to vector<1x64xf32>
    %447 = arith.subf %446, %439 : vector<1x64xf32>
    %448 = arith.mulf %447, %445 : vector<1x64xf32>
    %449 = arith.mulf %439, %418 : vector<1x64xf32>
    %450 = arith.addf %448, %449 : vector<1x64xf32>
    %451 = vector.extract_strided_slice %450 {offsets = [0, 0], sizes = [1, 32], strides = [1, 1]} : vector<1x64xf32> to vector<1x32xf32>
    %452 = vector.extract_strided_slice %450 {offsets = [0, 32], sizes = [1, 32], strides = [1, 1]} : vector<1x64xf32> to vector<1x32xf32>
    %453 = arith.index_cast %c3_i32_136 : i32 to index
    %c0_141 = arith.constant 0 : index
    %454 = vector.load %arg7[%453, %c0_141] : memref<8x128xf32, #tpu.memory_space<vmem>>, vector<1x32xf32>
    tpu.vector_store %arg7[%453, %c0_141], %451 {strides = array<i32>} : memref<8x128xf32, #tpu.memory_space<vmem>>, vector<1x32xf32>,
    %c7_i32_142 = arith.constant 7 : i32
    %455 = arith.subi %c7_i32_142, %c3_i32_136 : i32
    %456 = arith.index_cast %455 : i32 to index
    %c32_143 = arith.constant 32 : index
    %457 = vector.load %arg7[%456, %c32_143] : memref<8x128xf32, #tpu.memory_space<vmem>>, vector<1x32xf32>
    tpu.vector_store %arg7[%456, %c32_143], %452 {strides = array<i32>} : memref<8x128xf32, #tpu.memory_space<vmem>>, vector<1x32xf32>,
    %c4_i32_144 = arith.constant 4 : i32
    %458 = arith.index_cast %c4_i32_144 : i32 to index
    %c0_145 = arith.constant 0 : index
    %459 = vector.load %arg8[%458, %c0_145] : memref<8x192xf32, #tpu.memory_space<vmem>>, vector<1x192xf32>
    %460 = arith.truncf %450 : vector<1x64xf32> to vector<1x64xbf16>
    %cst_146 = arith.constant dense<0.000000e+00> : vector<1x192xf32>
    %461 = tpu.matmul %460, %326, %cst_146 {dimension_numbers = #tpu.dot_dimension_numbers<[1], [0], [0], [1], [0, 0, 1, 1], [], []>} : vector<1x64xbf16>, vector<64x192xbf16>, vector<1x192xf32> -> vector<1x192xf32>
    %462 = vector.extract_strided_slice %459 {offsets = [0, 0], sizes = [1, 128], strides = [1, 1]} : vector<1x192xf32> to vector<1x128xf32>
    %463 = vector.extract_strided_slice %461 {offsets = [0, 0], sizes = [1, 128], strides = [1, 1]} : vector<1x192xf32> to vector<1x128xf32>
    %464 = arith.addf %462, %463 : vector<1x128xf32>
    %465 = arith.negf %464 : vector<1x128xf32>
    %466 = math.exp %465 : vector<1x128xf32>
    %cst_147 = arith.constant 1.000000e+00 : f32
    %467 = vector.broadcast %cst_147 : f32 to vector<1x128xf32>
    %468 = arith.addf %467, %466 : vector<1x128xf32>
    %469 = arith.divf %467, %468 : vector<1x128xf32>
    %470 = vector.extract_strided_slice %469 {offsets = [0, 0], sizes = [1, 64], strides = [1, 1]} : vector<1x128xf32> to vector<1x64xf32>
    %471 = vector.extract_strided_slice %469 {offsets = [0, 64], sizes = [1, 64], strides = [1, 1]} : vector<1x128xf32> to vector<1x64xf32>
    %472 = vector.extract_strided_slice %459 {offsets = [0, 128], sizes = [1, 64], strides = [1, 1]} : vector<1x192xf32> to vector<1x64xf32>
    %473 = vector.extract_strided_slice %461 {offsets = [0, 128], sizes = [1, 64], strides = [1, 1]} : vector<1x192xf32> to vector<1x64xf32>
    %474 = arith.addf %473, %328 : vector<1x64xf32>
    %475 = arith.mulf %470, %474 : vector<1x64xf32>
    %476 = arith.addf %472, %475 : vector<1x64xf32>
    %477 = math.tanh %476 : vector<1x64xf32>
    %cst_148 = arith.constant 1.000000e+00 : f32
    %478 = vector.broadcast %cst_148 : f32 to vector<1x64xf32>
    %479 = arith.subf %478, %471 : vector<1x64xf32>
    %480 = arith.mulf %479, %477 : vector<1x64xf32>
    %481 = arith.mulf %471, %450 : vector<1x64xf32>
    %482 = arith.addf %480, %481 : vector<1x64xf32>
    %483 = vector.extract_strided_slice %482 {offsets = [0, 0], sizes = [1, 32], strides = [1, 1]} : vector<1x64xf32> to vector<1x32xf32>
    %484 = vector.extract_strided_slice %482 {offsets = [0, 32], sizes = [1, 32], strides = [1, 1]} : vector<1x64xf32> to vector<1x32xf32>
    %485 = arith.index_cast %c4_i32_144 : i32 to index
    %c0_149 = arith.constant 0 : index
    %486 = vector.load %arg7[%485, %c0_149] : memref<8x128xf32, #tpu.memory_space<vmem>>, vector<1x32xf32>
    tpu.vector_store %arg7[%485, %c0_149], %483 {strides = array<i32>} : memref<8x128xf32, #tpu.memory_space<vmem>>, vector<1x32xf32>,
    %c7_i32_150 = arith.constant 7 : i32
    %487 = arith.subi %c7_i32_150, %c4_i32_144 : i32
    %488 = arith.index_cast %487 : i32 to index
    %c32_151 = arith.constant 32 : index
    %489 = vector.load %arg7[%488, %c32_151] : memref<8x128xf32, #tpu.memory_space<vmem>>, vector<1x32xf32>
    tpu.vector_store %arg7[%488, %c32_151], %484 {strides = array<i32>} : memref<8x128xf32, #tpu.memory_space<vmem>>, vector<1x32xf32>,
    %c5_i32_152 = arith.constant 5 : i32
    %490 = arith.index_cast %c5_i32_152 : i32 to index
    %c0_153 = arith.constant 0 : index
    %491 = vector.load %arg8[%490, %c0_153] : memref<8x192xf32, #tpu.memory_space<vmem>>, vector<1x192xf32>
    %492 = arith.truncf %482 : vector<1x64xf32> to vector<1x64xbf16>
    %cst_154 = arith.constant dense<0.000000e+00> : vector<1x192xf32>
    %493 = tpu.matmul %492, %326, %cst_154 {dimension_numbers = #tpu.dot_dimension_numbers<[1], [0], [0], [1], [0, 0, 1, 1], [], []>} : vector<1x64xbf16>, vector<64x192xbf16>, vector<1x192xf32> -> vector<1x192xf32>
    %494 = vector.extract_strided_slice %491 {offsets = [0, 0], sizes = [1, 128], strides = [1, 1]} : vector<1x192xf32> to vector<1x128xf32>
    %495 = vector.extract_strided_slice %493 {offsets = [0, 0], sizes = [1, 128], strides = [1, 1]} : vector<1x192xf32> to vector<1x128xf32>
    %496 = arith.addf %494, %495 : vector<1x128xf32>
    %497 = arith.negf %496 : vector<1x128xf32>
    %498 = math.exp %497 : vector<1x128xf32>
    %cst_155 = arith.constant 1.000000e+00 : f32
    %499 = vector.broadcast %cst_155 : f32 to vector<1x128xf32>
    %500 = arith.addf %499, %498 : vector<1x128xf32>
    %501 = arith.divf %499, %500 : vector<1x128xf32>
    %502 = vector.extract_strided_slice %501 {offsets = [0, 0], sizes = [1, 64], strides = [1, 1]} : vector<1x128xf32> to vector<1x64xf32>
    %503 = vector.extract_strided_slice %501 {offsets = [0, 64], sizes = [1, 64], strides = [1, 1]} : vector<1x128xf32> to vector<1x64xf32>
    %504 = vector.extract_strided_slice %491 {offsets = [0, 128], sizes = [1, 64], strides = [1, 1]} : vector<1x192xf32> to vector<1x64xf32>
    %505 = vector.extract_strided_slice %493 {offsets = [0, 128], sizes = [1, 64], strides = [1, 1]} : vector<1x192xf32> to vector<1x64xf32>
    %506 = arith.addf %505, %328 : vector<1x64xf32>
    %507 = arith.mulf %502, %506 : vector<1x64xf32>
    %508 = arith.addf %504, %507 : vector<1x64xf32>
    %509 = math.tanh %508 : vector<1x64xf32>
    %cst_156 = arith.constant 1.000000e+00 : f32
    %510 = vector.broadcast %cst_156 : f32 to vector<1x64xf32>
    %511 = arith.subf %510, %503 : vector<1x64xf32>
    %512 = arith.mulf %511, %509 : vector<1x64xf32>
    %513 = arith.mulf %503, %482 : vector<1x64xf32>
    %514 = arith.addf %512, %513 : vector<1x64xf32>
    %515 = vector.extract_strided_slice %514 {offsets = [0, 0], sizes = [1, 32], strides = [1, 1]} : vector<1x64xf32> to vector<1x32xf32>
    %516 = vector.extract_strided_slice %514 {offsets = [0, 32], sizes = [1, 32], strides = [1, 1]} : vector<1x64xf32> to vector<1x32xf32>
    %517 = arith.index_cast %c5_i32_152 : i32 to index
    %c0_157 = arith.constant 0 : index
    %518 = vector.load %arg7[%517, %c0_157] : memref<8x128xf32, #tpu.memory_space<vmem>>, vector<1x32xf32>
    tpu.vector_store %arg7[%517, %c0_157], %515 {strides = array<i32>} : memref<8x128xf32, #tpu.memory_space<vmem>>, vector<1x32xf32>,
    %c7_i32_158 = arith.constant 7 : i32
    %519 = arith.subi %c7_i32_158, %c5_i32_152 : i32
    %520 = arith.index_cast %519 : i32 to index
    %c32_159 = arith.constant 32 : index
    %521 = vector.load %arg7[%520, %c32_159] : memref<8x128xf32, #tpu.memory_space<vmem>>, vector<1x32xf32>
    tpu.vector_store %arg7[%520, %c32_159], %516 {strides = array<i32>} : memref<8x128xf32, #tpu.memory_space<vmem>>, vector<1x32xf32>,
    %c6_i32_160 = arith.constant 6 : i32
    %522 = arith.index_cast %c6_i32_160 : i32 to index
    %c0_161 = arith.constant 0 : index
    %523 = vector.load %arg8[%522, %c0_161] : memref<8x192xf32, #tpu.memory_space<vmem>>, vector<1x192xf32>
    %524 = arith.truncf %514 : vector<1x64xf32> to vector<1x64xbf16>
    %cst_162 = arith.constant dense<0.000000e+00> : vector<1x192xf32>
    %525 = tpu.matmul %524, %326, %cst_162 {dimension_numbers = #tpu.dot_dimension_numbers<[1], [0], [0], [1], [0, 0, 1, 1], [], []>} : vector<1x64xbf16>, vector<64x192xbf16>, vector<1x192xf32> -> vector<1x192xf32>
    %526 = vector.extract_strided_slice %523 {offsets = [0, 0], sizes = [1, 128], strides = [1, 1]} : vector<1x192xf32> to vector<1x128xf32>
    %527 = vector.extract_strided_slice %525 {offsets = [0, 0], sizes = [1, 128], strides = [1, 1]} : vector<1x192xf32> to vector<1x128xf32>
    %528 = arith.addf %526, %527 : vector<1x128xf32>
    %529 = arith.negf %528 : vector<1x128xf32>
    %530 = math.exp %529 : vector<1x128xf32>
    %cst_163 = arith.constant 1.000000e+00 : f32
    %531 = vector.broadcast %cst_163 : f32 to vector<1x128xf32>
    %532 = arith.addf %531, %530 : vector<1x128xf32>
    %533 = arith.divf %531, %532 : vector<1x128xf32>
    %534 = vector.extract_strided_slice %533 {offsets = [0, 0], sizes = [1, 64], strides = [1, 1]} : vector<1x128xf32> to vector<1x64xf32>
    %535 = vector.extract_strided_slice %533 {offsets = [0, 64], sizes = [1, 64], strides = [1, 1]} : vector<1x128xf32> to vector<1x64xf32>
    %536 = vector.extract_strided_slice %523 {offsets = [0, 128], sizes = [1, 64], strides = [1, 1]} : vector<1x192xf32> to vector<1x64xf32>
    %537 = vector.extract_strided_slice %525 {offsets = [0, 128], sizes = [1, 64], strides = [1, 1]} : vector<1x192xf32> to vector<1x64xf32>
    %538 = arith.addf %537, %328 : vector<1x64xf32>
    %539 = arith.mulf %534, %538 : vector<1x64xf32>
    %540 = arith.addf %536, %539 : vector<1x64xf32>
    %541 = math.tanh %540 : vector<1x64xf32>
    %cst_164 = arith.constant 1.000000e+00 : f32
    %542 = vector.broadcast %cst_164 : f32 to vector<1x64xf32>
    %543 = arith.subf %542, %535 : vector<1x64xf32>
    %544 = arith.mulf %543, %541 : vector<1x64xf32>
    %545 = arith.mulf %535, %514 : vector<1x64xf32>
    %546 = arith.addf %544, %545 : vector<1x64xf32>
    %547 = vector.extract_strided_slice %546 {offsets = [0, 0], sizes = [1, 32], strides = [1, 1]} : vector<1x64xf32> to vector<1x32xf32>
    %548 = vector.extract_strided_slice %546 {offsets = [0, 32], sizes = [1, 32], strides = [1, 1]} : vector<1x64xf32> to vector<1x32xf32>
    %549 = arith.index_cast %c6_i32_160 : i32 to index
    %c0_165 = arith.constant 0 : index
    %550 = vector.load %arg7[%549, %c0_165] : memref<8x128xf32, #tpu.memory_space<vmem>>, vector<1x32xf32>
    tpu.vector_store %arg7[%549, %c0_165], %547 {strides = array<i32>} : memref<8x128xf32, #tpu.memory_space<vmem>>, vector<1x32xf32>,
    %c7_i32_166 = arith.constant 7 : i32
    %551 = arith.subi %c7_i32_166, %c6_i32_160 : i32
    %552 = arith.index_cast %551 : i32 to index
    %c32_167 = arith.constant 32 : index
    %553 = vector.load %arg7[%552, %c32_167] : memref<8x128xf32, #tpu.memory_space<vmem>>, vector<1x32xf32>
    tpu.vector_store %arg7[%552, %c32_167], %548 {strides = array<i32>} : memref<8x128xf32, #tpu.memory_space<vmem>>, vector<1x32xf32>,
    %c7_i32_168 = arith.constant 7 : i32
    %554 = arith.index_cast %c7_i32_168 : i32 to index
    %c0_169 = arith.constant 0 : index
    %555 = vector.load %arg8[%554, %c0_169] : memref<8x192xf32, #tpu.memory_space<vmem>>, vector<1x192xf32>
    %556 = arith.truncf %546 : vector<1x64xf32> to vector<1x64xbf16>
    %cst_170 = arith.constant dense<0.000000e+00> : vector<1x192xf32>
    %557 = tpu.matmul %556, %326, %cst_170 {dimension_numbers = #tpu.dot_dimension_numbers<[1], [0], [0], [1], [0, 0, 1, 1], [], []>} : vector<1x64xbf16>, vector<64x192xbf16>, vector<1x192xf32> -> vector<1x192xf32>
    %558 = vector.extract_strided_slice %555 {offsets = [0, 0], sizes = [1, 128], strides = [1, 1]} : vector<1x192xf32> to vector<1x128xf32>
    %559 = vector.extract_strided_slice %557 {offsets = [0, 0], sizes = [1, 128], strides = [1, 1]} : vector<1x192xf32> to vector<1x128xf32>
    %560 = arith.addf %558, %559 : vector<1x128xf32>
    %561 = arith.negf %560 : vector<1x128xf32>
    %562 = math.exp %561 : vector<1x128xf32>
    %cst_171 = arith.constant 1.000000e+00 : f32
    %563 = vector.broadcast %cst_171 : f32 to vector<1x128xf32>
    %564 = arith.addf %563, %562 : vector<1x128xf32>
    %565 = arith.divf %563, %564 : vector<1x128xf32>
    %566 = vector.extract_strided_slice %565 {offsets = [0, 0], sizes = [1, 64], strides = [1, 1]} : vector<1x128xf32> to vector<1x64xf32>
    %567 = vector.extract_strided_slice %565 {offsets = [0, 64], sizes = [1, 64], strides = [1, 1]} : vector<1x128xf32> to vector<1x64xf32>
    %568 = vector.extract_strided_slice %555 {offsets = [0, 128], sizes = [1, 64], strides = [1, 1]} : vector<1x192xf32> to vector<1x64xf32>
    %569 = vector.extract_strided_slice %557 {offsets = [0, 128], sizes = [1, 64], strides = [1, 1]} : vector<1x192xf32> to vector<1x64xf32>
    %570 = arith.addf %569, %328 : vector<1x64xf32>
    %571 = arith.mulf %566, %570 : vector<1x64xf32>
    %572 = arith.addf %568, %571 : vector<1x64xf32>
    %573 = math.tanh %572 : vector<1x64xf32>
    %cst_172 = arith.constant 1.000000e+00 : f32
    %574 = vector.broadcast %cst_172 : f32 to vector<1x64xf32>
    %575 = arith.subf %574, %567 : vector<1x64xf32>
    %576 = arith.mulf %575, %573 : vector<1x64xf32>
    %577 = arith.mulf %567, %546 : vector<1x64xf32>
    %578 = arith.addf %576, %577 : vector<1x64xf32>
    %579 = vector.extract_strided_slice %578 {offsets = [0, 0], sizes = [1, 32], strides = [1, 1]} : vector<1x64xf32> to vector<1x32xf32>
    %580 = vector.extract_strided_slice %578 {offsets = [0, 32], sizes = [1, 32], strides = [1, 1]} : vector<1x64xf32> to vector<1x32xf32>
    %581 = arith.index_cast %c7_i32_168 : i32 to index
    %c0_173 = arith.constant 0 : index
    %582 = vector.load %arg7[%581, %c0_173] : memref<8x128xf32, #tpu.memory_space<vmem>>, vector<1x32xf32>
    tpu.vector_store %arg7[%581, %c0_173], %579 {strides = array<i32>} : memref<8x128xf32, #tpu.memory_space<vmem>>, vector<1x32xf32>,
    %c7_i32_174 = arith.constant 7 : i32
    %583 = arith.subi %c7_i32_174, %c7_i32_168 : i32
    %584 = arith.index_cast %583 : i32 to index
    %c32_175 = arith.constant 32 : index
    %585 = vector.load %arg7[%584, %c32_175] : memref<8x128xf32, #tpu.memory_space<vmem>>, vector<1x32xf32>
    tpu.vector_store %arg7[%584, %c32_175], %580 {strides = array<i32>} : memref<8x128xf32, #tpu.memory_space<vmem>>, vector<1x32xf32>,
    %c8_i32_176 = arith.constant 8 : i32
    %586 = vector.extract_strided_slice %578 {offsets = [0, 0], sizes = [1, 32], strides = [1, 1]} : vector<1x64xf32> to vector<1x32xf32>
    %587 = vector.extract_strided_slice %578 {offsets = [0, 32], sizes = [1, 32], strides = [1, 1]} : vector<1x64xf32> to vector<1x32xf32>
    %588 = arith.addf %586, %587 : vector<1x32xf32>
    %c1_177 = arith.constant 1 : index
    %c0_178 = arith.constant 0 : index
    %589 = vector.load %arg6[%c1_177, %c0_178] : memref<2x32xf32, #tpu.memory_space<vmem>>, vector<1x32xf32>
    tpu.vector_store %arg6[%c1_177, %c0_178], %588 {strides = array<i32>} : memref<2x32xf32, #tpu.memory_space<vmem>>, vector<1x32xf32>,
    %c0_179 = arith.constant 0 : index
    %c0_180 = arith.constant 0 : index
    %590 = vector.load %arg7[%c0_179, %c0_180] : memref<8x128xf32, #tpu.memory_space<vmem>>, vector<8x128xf32>
    %591 = vector.extract_strided_slice %590 {offsets = [0, 0], sizes = [8, 32], strides = [1, 1]} : vector<8x128xf32> to vector<8x32xf32>
    %592 = vector.extract_strided_slice %590 {offsets = [0, 32], sizes = [8, 32], strides = [1, 1]} : vector<8x128xf32> to vector<8x32xf32>
    %593 = arith.addf %591, %592 : vector<8x32xf32>
    %c0_181 = arith.constant 0 : index
    %c0_182 = arith.constant 0 : index
    %594 = vector.load %arg5[%c0_181, %c0_182] : memref<8x32xf32, #tpu.memory_space<vmem>>, vector<8x32xf32>
    tpu.vector_store %arg5[%c0_181, %c0_182], %593 {strides = array<i32>} : memref<8x32xf32, #tpu.memory_space<vmem>>, vector<8x32xf32>,
    return
  }
}

</mosaic_0001>

<bundles_post_ra>
// kernel: rnn_en_forward_pallas.1
= control target key start
LH: loop header
LB: loop body
LE: loop exit
PB: predicated region body
PF: predicated region fallthrough
CT: control target
= control target key end

     0   :  { %12 = vsyncpa [#allocation5], 0  ;;  %v2129_v2 = vmov 0   ;;  %s2780_s0 = inlined_call_operand.vmem [shape: f32[8,128], index: 0, kind: input, shape index: {}]   ;;  %s2781_s1 = inlined_call_operand.vmem [shape: bf16[2,128,192], index: 1, kind: input, shape index: {}]   ;;  %s2782_s2 = inlined_call_operand.vmem [shape: f32[2,1,192], index: 2, kind: input, shape index: {}]   ;;  %s2783_s3 = inlined_call_operand.vmem [shape: bf16[2,64,192], index: 3, kind: input, shape index: {}]   ;;  %s2784_s4 = inlined_call_operand.vmem [shape: f32[2,1,64], index: 4, kind: input, shape index: {}]   ;;  %s2785_s5 = inlined_call_operand.hbm [shape: f32[8,32], index: 5, kind: output, shape index: {0}]   ;;  %s2786_s6 = inlined_call_operand.hbm [shape: f32[2,32], index: 6, kind: output, shape index: {1}]  }
   0x1   :  { %v1917_v0 = vld [vmem:[%s2781_s1 + $0x74] ss:$8 sps:$4 sm:$0xff]   ;;  %v1919_v1 = vld [vmem:[%s2781_s1 + $0x70] ss:$8 sps:$4 sm:$0xff]   ;;  %167 = vmatprep.mubr.bf16.mxu0 %v2129_v2  ;;  %264 = vmatprep.mubr.bf16.mxu1 %v2129_v2  ;;  %v1920_v3 = vld [vmem:[%s2781_s1 + $0x64] ss:$8 sps:$4 sm:$0xff]  }
   0x2   :  { %135 = vmatprep.subr.bf16.mxu0 %v1917_v0  ;;  %v1922_v4 = vld [vmem:[%s2781_s1 + $0x60] ss:$8 sps:$4 sm:$0xff]   ;;  %v1923_v5 = vld [vmem:[%s2781_s1 + $0x54] ss:$8 sps:$4 sm:$0xff]   ;;  %v1925_v6 = vld [vmem:[%s2781_s1 + $0x50] ss:$8 sps:$4 sm:$0xff]  }
   0x3   :  { %136 = vmatpush1.bf16.msra.mxu0 %v1919_v1  ;;  %v1926_v7 = vld [vmem:[%s2781_s1 + $0x44] ss:$8 sps:$4 sm:$0xff]   ;;  %v2195_v8 = vld [vmem:[%s2783_s3 + $0x34] ss:$8 sps:$4 sm:$0xff]   ;;  %v2200_v9 = vld [vmem:[%s2783_s3 + $0x30] ss:$8 sps:$4 sm:$0xff]  }
   0x4   :  { %137 = vmatprep.subr.bf16.mxu0 %v1920_v3  ;;  %v1928_v10 = vld [vmem:[%s2781_s1 + $0x40] ss:$8 sps:$4 sm:$0xff]   ;;  %240 = vmatprep.subr.bf16.mxu1 %v2195_v8  ;;  %v2210_v11 = vld [vmem:[%s2783_s3 + $0x24] ss:$8 sps:$4 sm:$0xff]   ;;  %v1929_v13 = vld [vmem:[%s2781_s1 + $0x34] ss:$8 sps:$4 sm:$0xff]  }
   0x5   :  { %241 = vmatpush1.bf16.msra.mxu1 %v2200_v9  ;;  %v2215_v12 = vld [vmem:[%s2783_s3 + $0x20] ss:$8 sps:$4 sm:$0xff]   ;;  %v1931_v14 = vld [vmem:[%s2781_s1 + $0x30] ss:$8 sps:$4 sm:$0xff]   ;;  %v2227_v15 = vld [vmem:[%s2783_s3 + $0x14] ss:$8 sps:$4 sm:$0xff]  }
   0x6   :  { %242 = vmatprep.subr.bf16.mxu1 %v2210_v11  ;;  %v2233_v16 = vld [vmem:[%s2783_s3 + $0x10] ss:$8 sps:$4 sm:$0xff]   ;;  %v1932_v17 = vld [vmem:[%s2781_s1 + $0x24] ss:$8 sps:$4 sm:$0xff]   ;;  %v1934_v19 = vld [vmem:[%s2781_s1 + $0x20] ss:$8 sps:$4 sm:$0xff]  }
   0x7   :  { %138 = vmatpush1.bf16.msra.mxu0 %v1922_v4  ;;  %v2242_v18 = vld [vmem:[%s2783_s3 + $0x4] ss:$8 sps:$4 sm:$0xff]   ;;  %v2250_v20 = vld [vmem:[%s2783_s3] ss:$8 sps:$4 sm:$0xff]   ;;  %v1938_v21 = vld [vmem:[%s2781_s1 + $0x14] ss:$8 sps:$4 sm:$0xff]  }
   0x8   :  { %139 = vmatprep.subr.bf16.mxu0 %v1923_v5  ;;  %v1940_v22 = vld [vmem:[%s2781_s1 + $0x10] ss:$8 sps:$4 sm:$0xff]   ;;  %v1944_v23 = vld [vmem:[%s2781_s1 + $0x4] ss:$8 sps:$4 sm:$0xff]  }
   0x9   :  { %243 = vmatpush1.bf16.msra.mxu1 %v2215_v12 }
   0xa   :  { %244 = vmatprep.subr.bf16.mxu1 %v2227_v15 }
   0xb   :  { %140 = vmatpush1.bf16.msra.mxu0 %v1925_v6 }
   0xc   :  { %141 = vmatprep.subr.bf16.mxu0 %v1926_v7 }
   0xd   :  { %245 = vmatpush1.bf16.msra.mxu1 %v2233_v16 }
   0xe   :  { %246 = vmatprep.subr.bf16.mxu1 %v2242_v18 }
   0xf   :  { %142 = vmatpush1.bf16.msra.mxu0 %v1928_v10 }
  0x10   :  { %143 = vmatprep.subr.bf16.mxu0 %v1929_v13 }
  0x11   :  { %247 = vmatpush1.bf16.msra.mxu1 %v2250_v20 }
  0x12   :  { %328 = vmatprep.subr.bf16.mxu1 %v2195_v8 }
  0x13   :  { %144 = vmatpush1.bf16.msra.mxu0 %v1931_v14 }
  0x14   :  { %145 = vmatprep.subr.bf16.mxu0 %v1932_v17 }
  0x17   :  { %146 = vmatpush1.bf16.msra.mxu0 %v1934_v19 }
  0x18   :  { %147 = vmatprep.subr.bf16.mxu0 %v1938_v21 }
  0x19   :  { %13 = vsyncpa [#allocation7], 0  ;;  %265 = vmatmul.mubr.bf16.vlgmr.msra.gmra.mxu1 %v2129_v2  ;;  %v1946_v24 = vld [vmem:[%s2781_s1] ss:$8 sps:$4 sm:$0xff]   ;;  %v45_v27 = vlaneseq  ;;  %vm177_vm0 = vcmask 523264   ;;  %s2130_s26 = smov 64  }
  0x1a   :  { %v25_v25 = vld [vmem:[%s2780_s0] sm:$0xff]  ;;  %329 = vmatpush1.bf16.msra.mxu1 %v2200_v9  ;;  %352 = vmatprep.mubr.bf16.mxu1 %v2129_v2  ;;  %vm303_vm1 = vcmask 253952   ;;  %vm305_vm2 = vcmask 516352   ;;  %vm307_vm3 = vcmask 778752   ;;  %vm309_vm4 = vcmask 1041152   ;;  %s2132_s28 = smov [#allocation4]  }
  0x1b   :  { %148 = vmatpush1.bf16.msra.mxu0 %v1940_v22  ;;  %330 = vmatprep.subr.bf16.mxu1 %v2210_v11  ;;  %v26_v26 = vpack.c.bf16 %v25_v25, %v25_v25  ;;  %v2291_v28 = vshrl.u32 %v45_v27, 7  ;;  %v43_v31 = vld [vmem:[%s2782_s2] sm:$0x3]  ;;  %s1786_s29 = sshll.u32 %s2132_s28, 4  ;;  %vm1778_vm5 = vcmask 261120   ;;  %s2133_s30 = smov [#allocation6]   ;;  %s1787_s29 = int_to_ptr.vmem [resolvable:$true] %s1786_s29 }
  0x1c   :  { %149 = vmatprep.subr.bf16.mxu0 %v1944_v23  ;;  %v2307_v49 = vld [vmem:[%s2784_s4] sm:$0x1]  ;;  %s1796_s7 = sshll.u32 %s2133_s30, 4  ;;  %s2085_s8 = scalar_lea.vmem %s1787_s29, 128  ;;  %s1797_s7 = int_to_ptr.vmem [resolvable:$true] %s1796_s7 }
  0x1d   :  { %v2294_v30 = vsub.s32 0, %v2291_v28  ;;  %v51_v33 = vsub.s32 1, %v2291_v28  ;;  %v2620_v28 = vld [vmem:[%s2784_s4 + $0x1] sm:$0x1]  ;;  %s2131_s4 = smov 96   ;;  %p2086_p0 = scmp.ne.s32.totalorder %s1787_s29, %s2085_s8 }
  0x1e   :  { %331 = vmatpush1.bf16.msra.mxu1 %v2215_v12  ;;  %p2090_p1 = scmp.lt.s32.totalorder %s1787_s29, %s1787_s29  ;;  %p2091_p2 = scmp.lt.s32.totalorder %s2085_s8, %s2085_s8 }
  0x1f   :  { %150 = vmatpush1.bf16.msra.mxu0 %v1946_v24  ;;  %332 = vmatprep.subr.bf16.mxu1 %v2227_v15  ;;  %v48_v35 = vrot.slane %v43_v31, %v2294_v30  ;;  %v52_v37 = vrot.slane %v43_v31, %v51_v33 }
  0x20   :  { %412 = vmatprep.subr.bf16.mxu0 %v2195_v8  ;;  %p2092_p3 = por %p2091_p2, %p2090_p1 }
  0x22   :  { %168 = vmatmul.mubr.bf16.vlgmr.msra.gmra.mxu0 %v26_v26  ;;  %333 = vmatpush1.bf16.msra.mxu1 %v2233_v16  ;;  %p2093_p4 = pnand %p2092_p3, %p2086_p0 }
  0x23   :  { %413 = vmatpush1.bf16.msra.mxu0 %v2200_v9  ;;  %334 = vmatprep.subr.bf16.mxu1 %v2242_v18 }
  0x24   :  { %414 = vmatprep.subr.bf16.mxu0 %v2210_v11  ;;  %436 = vmatprep.mubr.bf16.mxu0 %v2129_v2 }
  0x26   :  { %335 = vmatpush1.bf16.msra.mxu1 %v2250_v20 }
  0x27   :  { %415 = vmatpush1.bf16.msra.mxu0 %v2215_v12  ;;  %496 = vmatprep.subr.bf16.mxu1 %v2195_v8 }
  0x28   :  { %416 = vmatprep.subr.bf16.mxu0 %v2227_v15 }
  0x2b   :  { %417 = vmatpush1.bf16.msra.mxu0 %v2233_v16 }
  0x2c   :  { %418 = vmatprep.subr.bf16.mxu0 %v2242_v18 }
  0x2f   :  { %419 = vmatpush1.bf16.msra.mxu0 %v2250_v20 }
  0x30   :  { %580 = vmatprep.subr.bf16.mxu0 %v2195_v8 }
  0xd9   :  { %v266_v29 = vpop.f32.mrf.mxu1 }
  0xdb   :  { %v268_v32 = vpop.f32.mrf.mxu1 }
  0xdc   :  { %v280_v50 = vadd.f32 %v268_v32, %v2307_v49 }
  0xdd   :  { %v270_v34 = vpop.f32.mrf.mxu1 }
  0xdf   :  { %v271_v36 = vpop.f32.mrf.mxu1 }
  0xe2   :  { %v169_v38 = vpop.f32.mrf.mxu0 }
  0xe3   :  { %v170_v39 = vadd.f32 %v169_v38, %v48_v35 }
  0xe4   :  { %v171_v40 = vpop.f32.mrf.mxu0 }
  0xe5   :  { %176 = vst [vmem:[#allocation3] sm:$0xff] %v170_v39  ;;  %v172_v41 = vadd.f32 %v171_v40, %v52_v37 }
  0xe6   :  { %v173_v42 = vpop.f32.mrf.mxu0 }
  0xe7   :  { %178 = vst.msk [vmem:[#allocation3 + $0x8] sm:$0xff] %vm177_vm0, %v172_v41 }
  0xe8   :  { %v174_v43 = vpop.f32.mrf.mxu0 }
  0xee   :  { %v188_v44 = vld [vmem:[#allocation3] ss:$8 sm:$0x3]  ;;  %v312_v63 = vld [vmem:[#allocation3 + $0x1] ss:$8 sm:$0x3] }
  0xef   :  { %v273_v45 = vadd.f32 %v266_v29, %v188_v44  ;;  %v283_v53 = vrot.slane %v188_v44, 1  ;;  %v371_v19 = vrot.slane %v312_v63, 1  ;;  %v396_v32 = vld [vmem:[#allocation3 + $0x2] ss:$8 sm:$0x3] }
  0xf1   :  { %v1832_v46 = vmul.f32 -1.442695, %v273_v45  ;;  %v455_v45 = vrot.slane %v396_v32, 1 }
  0xf3   :  { %1989 = vpow2.f32 %v1832_v46 }
 0x100   :  { %v1990_v47 = vpop.eup %1989 }
 0x101   :  { %v277_v48 = vadd.f32 1.0, %v1990_v47 }
 0x103   :  { %1991 = vrcp.f32 %v277_v48 }
 0x110   :  { %v1992_v51 = vpop.eup %1991 }
 0x111   :  { %v281_v52 = vmul.f32 %v1992_v51, %v280_v50  ;;  %v287_v56 = vsub.f32 1.0, %v1992_v51  ;;  %v293_v58 = vmul.f32 0.0, %v1992_v51 }
 0x113   :  { %v285_v54 = vadd.f32 %v283_v53, %v281_v52 }
 0x115   :  { %1993 = vtanh.f32 %v285_v54 }
 0x122   :  { %v1994_v55 = vpop.eup %1993 }
 0x123   :  { %289 = vrot.lane.b32.xlu0 %v1994_v55, %s2130_s26 }
 0x195   :  { %v290_v57 = vpop.permute.xlu0 %289 }
 0x196   :  { %v292_v59 = vmul.f32 %v290_v57, %v287_v56  ;;  %v480_v56 = vld [vmem:[#allocation3 + $0x3] ss:$8 sm:$0x3] }
 0x198   :  { %v2311_v60 = vadd.f32 %v293_v58, %v292_v59 }
 0x19a   :  { %v313_v61 = vpack.c.bf16 %v2311_v60, %v2311_v60 }
 0x19c   :  { %315 = vrot.lane.b32.xlu0 %v313_v61, %s2130_s26 }
 0x20e   :  { %v316_v62 = vpop.permute.xlu0 %315 }
 0x20f   :  { %1833 = vmatmul.mubr.msk.bf16.vlgmr.msra.gmra.mxu1 %vm177_vm0, %v316_v62 }
 0x210   :  { %497 = vmatpush1.bf16.msra.mxu1 %v2200_v9  ;;  %520 = vmatprep.mubr.bf16.mxu1 %v2129_v2 }
 0x211   :  { %498 = vmatprep.subr.bf16.mxu1 %v2210_v11 }
 0x214   :  { %499 = vmatpush1.bf16.msra.mxu1 %v2215_v12 }
 0x215   :  { %500 = vmatprep.subr.bf16.mxu1 %v2227_v15 }
 0x218   :  { %501 = vmatpush1.bf16.msra.mxu1 %v2233_v16 }
 0x219   :  { %502 = vmatprep.subr.bf16.mxu1 %v2242_v18 }
 0x21c   :  { %503 = vmatpush1.bf16.msra.mxu1 %v2250_v20 }
 0x21d   :  { %664 = vmatprep.subr.bf16.mxu1 %v2195_v8 }
 0x2cf   :  { %v354_v0 = vpop.f32.mrf.mxu1 }
 0x2d0   :  { %v361_v1 = vadd.f32 %v354_v0, %v312_v63 }
 0x2d1   :  { %v356_v3 = vpop.f32.mrf.mxu1 }
 0x2d2   :  { %v1834_v4 = vmul.f32 -1.442695, %v361_v1  ;;  %v368_v13 = vadd.f32 %v356_v3, %v2307_v49 }
 0x2d3   :  { %v358_v5 = vpop.f32.mrf.mxu1 }
 0x2d4   :  { %1995 = vpow2.f32 %v1834_v4 }
 0x2d5   :  { %v359_v6 = vpop.f32.mrf.mxu1 }
 0x2d6   :  { %v539_v6 = vrot.slane %v480_v56, 1 }
 0x2e1   :  { %v1996_v7 = vpop.eup %1995 }
 0x2e2   :  { %v365_v10 = vadd.f32 1.0, %v1996_v7 }
 0x2e4   :  { %1997 = vrcp.f32 %v365_v10 }
 0x2f1   :  { %v1998_v14 = vpop.eup %1997 }
 0x2f2   :  { %v369_v17 = vmul.f32 %v1998_v14, %v368_v13  ;;  %v375_v23 = vsub.f32 1.0, %v1998_v14  ;;  %v381_v25 = vmul.f32 %v1998_v14, %v2311_v60 }
 0x2f4   :  { %v373_v21 = vadd.f32 %v371_v19, %v369_v17 }
 0x2f6   :  { %1999 = vtanh.f32 %v373_v21 }
 0x303   :  { %v2000_v22 = vpop.eup %1999 }
 0x304   :  { %377 = vrot.lane.b32.xlu1 %v2000_v22, %s2130_s26 }
 0x376   :  { %v378_v24 = vpop.permute.xlu1 %377 }
 0x377   :  { %v380_v26 = vmul.f32 %v378_v24, %v375_v23  ;;  %v564_v23 = vld [vmem:[#allocation3 + $0x4] ss:$8 sm:$0x3] }
 0x379   :  { %v2329_v27 = vadd.f32 %v381_v25, %v380_v26 }
 0x37b   :  { %v397_v29 = vpack.c.bf16 %v2329_v27, %v2329_v27 }
 0x37d   :  { %399 = vrot.lane.b32.xlu1 %v397_v29, %s2130_s26 }
 0x3ef   :  { %v400_v31 = vpop.permute.xlu1 %399 }
 0x3f0   :  { %1835 = vmatmul.mubr.msk.bf16.vlgmr.msra.gmra.mxu0 %vm177_vm0, %v400_v31 }
 0x3f1   :  { %581 = vmatpush1.bf16.msra.mxu0 %v2200_v9  ;;  %604 = vmatprep.mubr.bf16.mxu0 %v2129_v2 }
 0x3f2   :  { %582 = vmatprep.subr.bf16.mxu0 %v2210_v11 }
 0x3f5   :  { %583 = vmatpush1.bf16.msra.mxu0 %v2215_v12 }
 0x3f6   :  { %584 = vmatprep.subr.bf16.mxu0 %v2227_v15 }
 0x3f9   :  { %585 = vmatpush1.bf16.msra.mxu0 %v2233_v16 }
 0x3fa   :  { %586 = vmatprep.subr.bf16.mxu0 %v2242_v18 }
 0x3fd   :  { %587 = vmatpush1.bf16.msra.mxu0 %v2250_v20 }
 0x3fe   :  { %748 = vmatprep.subr.bf16.mxu0 %v2195_v8 }
 0x4b0   :  { %v438_v34 = vpop.f32.mrf.mxu0 }
 0x4b1   :  { %v445_v35 = vadd.f32 %v438_v34, %v396_v32 }
 0x4b2   :  { %v440_v36 = vpop.f32.mrf.mxu0 }
 0x4b3   :  { %v1836_v37 = vmul.f32 -1.442695, %v445_v35  ;;  %v452_v42 = vadd.f32 %v440_v36, %v2307_v49 }
 0x4b4   :  { %v442_v38 = vpop.f32.mrf.mxu0 }
 0x4b5   :  { %2001 = vpow2.f32 %v1836_v37 }
 0x4b6   :  { %v443_v39 = vpop.f32.mrf.mxu0 }
 0x4b7   :  { %v623_v39 = vrot.slane %v564_v23, 1 }
 0x4c2   :  { %v2002_v40 = vpop.eup %2001 }
 0x4c3   :  { %v449_v41 = vadd.f32 1.0, %v2002_v40 }
 0x4c5   :  { %2003 = vrcp.f32 %v449_v41 }
 0x4d2   :  { %v2004_v43 = vpop.eup %2003 }
 0x4d3   :  { %v453_v44 = vmul.f32 %v2004_v43, %v452_v42  ;;  %v459_v48 = vsub.f32 1.0, %v2004_v43  ;;  %v465_v51 = vmul.f32 %v2004_v43, %v2329_v27 }
 0x4d5   :  { %v457_v46 = vadd.f32 %v455_v45, %v453_v44 }
 0x4d7   :  { %2005 = vtanh.f32 %v457_v46 }
 0x4e4   :  { %v2006_v47 = vpop.eup %2005 }
 0x4e5   :  { %461 = vrot.lane.b32.xlu0 %v2006_v47, %s2130_s26 }
 0x557   :  { %v462_v50 = vpop.permute.xlu0 %461 }
 0x558   :  { %v464_v52 = vmul.f32 %v462_v50, %v459_v48  ;;  %v648_v50 = vld [vmem:[#allocation3 + $0x5] ss:$8 sm:$0x3] }
 0x55a   :  { %v2347_v53 = vadd.f32 %v465_v51, %v464_v52 }
 0x55c   :  { %v481_v54 = vpack.c.bf16 %v2347_v53, %v2347_v53 }
 0x55e   :  { %483 = vrot.lane.b32.xlu1 %v481_v54, %s2130_s26 }
 0x5d0   :  { %v484_v55 = vpop.permute.xlu1 %483 }
 0x5d1   :  { %1837 = vmatmul.mubr.msk.bf16.vlgmr.msra.gmra.mxu1 %vm177_vm0, %v484_v55 }
 0x5d2   :  { %665 = vmatpush1.bf16.msra.mxu1 %v2200_v9  ;;  %688 = vmatprep.mubr.bf16.mxu1 %v2129_v2 }
 0x5d3   :  { %666 = vmatprep.subr.bf16.mxu1 %v2210_v11 }
 0x5d6   :  { %667 = vmatpush1.bf16.msra.mxu1 %v2215_v12 }
 0x5d7   :  { %668 = vmatprep.subr.bf16.mxu1 %v2227_v15 }
 0x5da   :  { %669 = vmatpush1.bf16.msra.mxu1 %v2233_v16 }
 0x5db   :  { %670 = vmatprep.subr.bf16.mxu1 %v2242_v18 }
 0x5de   :  { %671 = vmatpush1.bf16.msra.mxu1 %v2250_v20 }
 0x5df   :  { %832 = vmatprep.subr.bf16.mxu1 %v2195_v8 }
 0x691   :  { %v522_v57 = vpop.f32.mrf.mxu1 }
 0x692   :  { %v529_v58 = vadd.f32 %v522_v57, %v480_v56 }
 0x693   :  { %v524_v59 = vpop.f32.mrf.mxu1 }
 0x694   :  { %v1838_v61 = vmul.f32 -1.442695, %v529_v58  ;;  %v536_v3 = vadd.f32 %v524_v59, %v2307_v49 }
 0x695   :  { %v526_v62 = vpop.f32.mrf.mxu1 }
 0x696   :  { %2007 = vpow2.f32 %v1838_v61 }
 0x697   :  { %v527_v63 = vpop.f32.mrf.mxu1 }
 0x6a3   :  { %v2008_v0 = vpop.eup %2007 }
 0x6a4   :  { %v533_v1 = vadd.f32 1.0, %v2008_v0 }
 0x6a6   :  { %2009 = vrcp.f32 %v533_v1 }
 0x6b3   :  { %v2010_v4 = vpop.eup %2009 }
 0x6b4   :  { %v537_v5 = vmul.f32 %v2010_v4, %v536_v3  ;;  %v543_v8 = vsub.f32 1.0, %v2010_v4  ;;  %v549_v14 = vmul.f32 %v2010_v4, %v2347_v53  ;;  %v732_v4 = vld [vmem:[#allocation3 + $0x6] ss:$8 sm:$0x3] }
 0x6b6   :  { %v541_v7 = vadd.f32 %v539_v6, %v537_v5 }
 0x6b8   :  { %2011 = vtanh.f32 %v541_v7 }
 0x6c5   :  { %v2012_v10 = vpop.eup %2011 }
 0x6c6   :  { %545 = vrot.lane.b32.xlu0 %v2012_v10, %s2130_s26 }
 0x738   :  { %v546_v13 = vpop.permute.xlu0 %545 }
 0x739   :  { %v548_v17 = vmul.f32 %v546_v13, %v543_v8 }
 0x73b   :  { %v2365_v19 = vadd.f32 %v549_v14, %v548_v17 }
 0x73d   :  { %v565_v21 = vpack.c.bf16 %v2365_v19, %v2365_v19 }
 0x73f   :  { %567 = vrot.lane.b32.xlu1 %v565_v21, %s2130_s26 }
 0x7b1   :  { %v568_v22 = vpop.permute.xlu1 %567 }
 0x7b2   :  { %1839 = vmatmul.mubr.msk.bf16.vlgmr.msra.gmra.mxu0 %vm177_vm0, %v568_v22 }
 0x7b3   :  { %749 = vmatpush1.bf16.msra.mxu0 %v2200_v9  ;;  %772 = vmatprep.mubr.bf16.mxu0 %v2129_v2 }
 0x7b4   :  { %750 = vmatprep.subr.bf16.mxu0 %v2210_v11 }
 0x7b7   :  { %751 = vmatpush1.bf16.msra.mxu0 %v2215_v12 }
 0x7b8   :  { %752 = vmatprep.subr.bf16.mxu0 %v2227_v15 }
 0x7bb   :  { %753 = vmatpush1.bf16.msra.mxu0 %v2233_v16 }
 0x7bc   :  { %754 = vmatprep.subr.bf16.mxu0 %v2242_v18 }
 0x7bf   :  { %755 = vmatpush1.bf16.msra.mxu0 %v2250_v20 }
 0x872   :  { %v606_v24 = vpop.f32.mrf.mxu0 }
 0x873   :  { %v613_v25 = vadd.f32 %v606_v24, %v564_v23  ;;  %v791_v24 = vrot.slane %v732_v4, 1 }
 0x874   :  { %v608_v26 = vpop.f32.mrf.mxu0 }
 0x875   :  { %v1840_v29 = vmul.f32 -1.442695, %v613_v25  ;;  %v620_v36 = vadd.f32 %v608_v26, %v2307_v49 }
 0x876   :  { %v610_v31 = vpop.f32.mrf.mxu0 }
 0x877   :  { %2013 = vpow2.f32 %v1840_v29 }
 0x878   :  { %v611_v32 = vpop.f32.mrf.mxu0 }
 0x884   :  { %v2014_v34 = vpop.eup %2013 }
 0x885   :  { %v617_v35 = vadd.f32 1.0, %v2014_v34 }
 0x887   :  { %2015 = vrcp.f32 %v617_v35 }
 0x894   :  { %v2016_v37 = vpop.eup %2015 }
 0x895   :  { %v621_v38 = vmul.f32 %v2016_v37, %v620_v36  ;;  %v627_v42 = vsub.f32 1.0, %v2016_v37  ;;  %v633_v44 = vmul.f32 %v2016_v37, %v2365_v19  ;;  %v299_v37 = vrot.slane %v2311_v60, %v2294_v30 }
 0x897   :  { %v625_v40 = vadd.f32 %v623_v39, %v621_v38  ;;  %v471_v38 = vrot.slane %v2347_v53, %v2294_v30 }
 0x899   :  { %2017 = vtanh.f32 %v625_v40 }
 0x8a6   :  { %v2018_v41 = vpop.eup %2017 }
 0x8a7   :  { %629 = vrot.lane.b32.xlu0 %v2018_v41, %s2130_s26 }
 0x919   :  { %v630_v43 = vpop.permute.xlu0 %629 }
 0x91a   :  { %v632_v45 = vmul.f32 %v630_v43, %v627_v42 }
 0x91c   :  { %v2382_v46 = vadd.f32 %v633_v44, %v632_v45  ;;  %v816_v44 = vld [vmem:[#allocation3 + $0x7] ss:$8 sm:$0x3] }
 0x91e   :  { %v649_v47 = vpack.c.bf16 %v2382_v46, %v2382_v46  ;;  %v639_v39 = vrot.slane %v2382_v46, %v2294_v30 }
 0x920   :  { %651 = vrot.lane.b32.xlu1 %v649_v47, %s2130_s26 }
 0x992   :  { %v652_v48 = vpop.permute.xlu1 %651 }
 0x993   :  { %1841 = vmatmul.mubr.msk.bf16.vlgmr.msra.gmra.mxu1 %vm177_vm0, %v652_v48 }
 0x994   :  { %833 = vmatpush1.bf16.msra.mxu1 %v2200_v9  ;;  %856 = vmatprep.mubr.bf16.mxu1 %v2129_v2 }
 0x995   :  { %834 = vmatprep.subr.bf16.mxu1 %v2210_v11 }
 0x998   :  { %835 = vmatpush1.bf16.msra.mxu1 %v2215_v12 }
 0x999   :  { %836 = vmatprep.subr.bf16.mxu1 %v2227_v15 }
 0x99c   :  { %837 = vmatpush1.bf16.msra.mxu1 %v2233_v16  ;;  %v707_v16 = vrot.slane %v648_v50, 1 }
 0x99d   :  { %838 = vmatprep.subr.bf16.mxu1 %v2242_v18 }
 0x9a0   :  { %839 = vmatpush1.bf16.msra.mxu1 %v2250_v20 }
 0xa53   :  { %v690_v51 = vpop.f32.mrf.mxu1 }
 0xa54   :  { %v697_v52 = vadd.f32 %v690_v51, %v648_v50 }
 0xa55   :  { %v692_v54 = vpop.f32.mrf.mxu1 }
 0xa56   :  { %v1842_v55 = vmul.f32 -1.442695, %v697_v52  ;;  %v704_v12 = vadd.f32 %v692_v54, %v2307_v49 }
 0xa57   :  { %v694_v9 = vpop.f32.mrf.mxu1 }
 0xa58   :  { %2019 = vpow2.f32 %v1842_v55 }
 0xa59   :  { %v695_v56 = vpop.f32.mrf.mxu1 }
 0xa65   :  { %v2020_v57 = vpop.eup %2019 }
 0xa66   :  { %v701_v11 = vadd.f32 1.0, %v2020_v57  ;;  %v875_v57 = vrot.slane %v816_v44, 1 }
 0xa68   :  { %2021 = vrcp.f32 %v701_v11 }
 0xa75   :  { %v2022_v15 = vpop.eup %2021 }
 0xa76   :  { %v705_v58 = vmul.f32 %v2022_v15, %v704_v12  ;;  %v711_v20 = vsub.f32 1.0, %v2022_v15  ;;  %v717_v62 = vmul.f32 %v2022_v15, %v2382_v46  ;;  %v1955_v15 = vld [vmem:[%s2781_s1 + $0xf4] ss:$8 sps:$4 sm:$0xff]  }
 0xa77   :  { %1024 = vmatprep.subr.bf16.mxu0 %v1955_v15 }
 0xa78   :  { %v709_v59 = vadd.f32 %v707_v16, %v705_v58  ;;  %v387_v58 = vrot.slane %v2329_v27, %v2294_v30  ;;  %v1956_v16 = vld [vmem:[%s2781_s1 + $0xe0] ss:$8 sps:$4 sm:$0xff]  }
 0xa7a   :  { %2023 = vtanh.f32 %v709_v59  ;;  %v1961_v59 = vld [vmem:[%s2781_s1 + $0xd4] ss:$8 sps:$4 sm:$0xff]  }
 0xa87   :  { %v2024_v18 = vpop.eup %2023 }
 0xa88   :  { %713 = vrot.lane.b32.xlu0 %v2024_v18, %s2130_s26  ;;  %v555_v18 = vrot.slane %v2365_v19, %v2294_v30 }
 0xafa   :  { %v714_v61 = vpop.permute.xlu0 %713 }
 0xafb   :  { %v716_v63 = vmul.f32 %v714_v61, %v711_v20  ;;  %v1959_v20 = vld [vmem:[%s2781_s1 + $0xd0] ss:$8 sps:$4 sm:$0xff]   ;;  %v1964_v61 = vld [vmem:[%s2781_s1 + $0xc4] ss:$8 sps:$4 sm:$0xff]  }
 0xafd   :  { %v2399_v0 = vadd.f32 %v717_v62, %v716_v63  ;;  %v1962_v63 = vld [vmem:[%s2781_s1 + $0xc0] ss:$8 sps:$4 sm:$0xff]  }
 0xaff   :  { %v733_v1 = vpack.c.bf16 %v2399_v0, %v2399_v0  ;;  %v723_v62 = vrot.slane %v2399_v0, %v2294_v30 }
 0xb01   :  { %735 = vrot.lane.b32.xlu1 %v733_v1, %s2130_s26  ;;  %v1967_v1 = vld [vmem:[%s2781_s1 + $0xb4] ss:$8 sps:$4 sm:$0xff]  }
 0xb73   :  { %v736_v3 = vpop.permute.xlu1 %735 }
 0xb74   :  { %1843 = vmatmul.mubr.msk.bf16.vlgmr.msra.gmra.mxu0 %vm177_vm0, %v736_v3  ;;  %v1965_v3 = vld [vmem:[%s2781_s1 + $0xb0] ss:$8 sps:$4 sm:$0xff]  }
 0xb75   :  { %1056 = vmatprep.mubr.bf16.mxu0 %v2129_v2 }
 0xc34   :  { %v774_v5 = vpop.f32.mrf.mxu0 }
 0xc35   :  { %v781_v6 = vadd.f32 %v774_v5, %v732_v4  ;;  %v1970_v4 = vld [vmem:[%s2781_s1 + $0xa4] ss:$8 sps:$4 sm:$0xff]   ;;  %v1968_v5 = vld [vmem:[%s2781_s1 + $0xa0] ss:$8 sps:$4 sm:$0xff]  }
 0xc36   :  { %v776_v7 = vpop.f32.mrf.mxu0 }
 0xc37   :  { %v1844_v10 = vmul.f32 -1.442695, %v781_v6  ;;  %v788_v21 = vadd.f32 %v776_v7, %v2307_v49  ;;  %v2490_v7 = vld [vmem:[%s2783_s3 + $0x74] ss:$8 sps:$4 sm:$0xff]  }
 0xc38   :  { %v778_v8 = vpop.f32.mrf.mxu0  ;;  %1127 = vmatprep.subr.bf16.mxu1 %v2490_v7 }
 0xc39   :  { %2025 = vpow2.f32 %v1844_v10 }
 0xc3a   :  { %v779_v13 = vpop.f32.mrf.mxu0 }
 0xc3b   :  { %v2495_v13 = vld [vmem:[%s2783_s3 + $0x70] ss:$8 sps:$4 sm:$0xff]  }
 0xc46   :  { %v2026_v14 = vpop.eup %2025 }
 0xc47   :  { %v785_v17 = vadd.f32 1.0, %v2026_v14 }
 0xc49   :  { %2027 = vrcp.f32 %v785_v17 }
 0xc56   :  { %v2028_v22 = vpop.eup %2027 }
 0xc57   :  { %v789_v23 = vmul.f32 %v2028_v22, %v788_v21  ;;  %v795_v29 = vsub.f32 1.0, %v2028_v22  ;;  %v801_v32 = vmul.f32 %v2028_v22, %v2399_v0  ;;  %v1976_v21 = vld [vmem:[%s2781_s1 + $0x94] ss:$8 sps:$4 sm:$0xff]   ;;  %v1974_v22 = vld [vmem:[%s2781_s1 + $0x90] ss:$8 sps:$4 sm:$0xff]  }
 0xc59   :  { %v793_v25 = vadd.f32 %v791_v24, %v789_v23  ;;  %v2509_v23 = vld [vmem:[%s2783_s3 + $0x64] ss:$8 sps:$4 sm:$0xff]   ;;  %v2514_v24 = vld [vmem:[%s2783_s3 + $0x60] ss:$8 sps:$4 sm:$0xff]  }
 0xc5b   :  { %2029 = vtanh.f32 %v793_v25 }
 0xc68   :  { %v2030_v26 = vpop.eup %2029 }
 0xc69   :  { %797 = vrot.lane.b32.xlu0 %v2030_v26, %s2130_s26  ;;  %v1982_v26 = vld [vmem:[%s2781_s1 + $0x84] ss:$8 sps:$4 sm:$0xff]  }
 0xcdb   :  { %v798_v31 = vpop.permute.xlu0 %797 }
 0xcdc   :  { %v800_v34 = vmul.f32 %v798_v31, %v795_v29  ;;  %v2524_v29 = vld [vmem:[%s2783_s3 + $0x54] ss:$8 sps:$4 sm:$0xff]  }
 0xcde   :  { %v2409_v35 = vadd.f32 %v801_v32, %v800_v34  ;;  %v1980_v32 = vld [vmem:[%s2781_s1 + $0x80] ss:$8 sps:$4 sm:$0xff]  }
 0xce0   :  { %v817_v36 = vpack.c.bf16 %v2409_v35, %v2409_v35  ;;  %v807_v40 = vrot.slane %v2409_v35, %v2294_v30 }
 0xce2   :  { %819 = vrot.lane.b32.xlu1 %v817_v36, %s2130_s26 }
 0xce6   :  { %300 = vrot.lane.b32.xlu1 %v299_v37, %s2130_s26  ;;  %v2542_v37 = vld [vmem:[%s2783_s3 + $0x50] ss:$8 sps:$4 sm:$0xff]  }
 0xcea   :  { %472 = vrot.lane.b32.xlu1 %v471_v38, %s2130_s26  ;;  %v2551_v38 = vld [vmem:[%s2783_s3 + $0x44] ss:$8 sps:$4 sm:$0xff]  }
 0xcee   :  { %640 = vrot.lane.b32.xlu1 %v639_v39, %s2130_s26 }
 0xcf2   :  { %808 = vrot.lane.b32.xlu1 %v807_v40, %s2130_s26 }
 0xd54   :  { %v820_v41 = vpop.permute.xlu1 %819 }
 0xd55   :  { %1845 = vmatmul.mubr.msk.bf16.vlgmr.msra.gmra.mxu1 %vm177_vm0, %v820_v41 }
 0xd56   :  { %1151 = vmatprep.mubr.bf16.mxu1 %v2129_v2  ;;  %1128 = vmatpush1.bf16.msra.mxu1 %v2495_v13 }
 0xd57   :  { %1129 = vmatprep.subr.bf16.mxu1 %v2509_v23 }
 0xd58   :  { %v301_v42 = vpop.permute.xlu1 %300 }
 0xd59   :  { %304 = vst.msk [vmem:[#allocation2] sm:$0x1] %vm303_vm1, %v301_v42 }
 0xd5a   :  { %306 = vst.msk [vmem:[#allocation2 + $0x7] sm:$0x1] %vm305_vm2, %v301_v42  ;;  %1130 = vmatpush1.bf16.msra.mxu1 %v2514_v24 }
 0xd5b   :  { %308 = vst.msk [vmem:[#allocation2 + $0x7] sm:$0x1] %vm307_vm3, %v2311_v60  ;;  %1131 = vmatprep.subr.bf16.mxu1 %v2524_v29 }
 0xd5c   :  { %310 = vst.msk [vmem:[#allocation2] sm:$0x1] %vm309_vm4, %v2311_v60  ;;  %v473_v43 = vpop.permute.xlu1 %472 }
 0xd5d   :  { %475 = vst.msk [vmem:[#allocation2 + $0x2] sm:$0x1] %vm303_vm1, %v473_v43 }
 0xd5e   :  { %476 = vst.msk [vmem:[#allocation2 + $0x5] sm:$0x1] %vm305_vm2, %v473_v43  ;;  %1132 = vmatpush1.bf16.msra.mxu1 %v2542_v37 }
 0xd5f   :  { %477 = vst.msk [vmem:[#allocation2 + $0x5] sm:$0x1] %vm307_vm3, %v2347_v53  ;;  %1133 = vmatprep.subr.bf16.mxu1 %v2551_v38 }
 0xd60   :  { %478 = vst.msk [vmem:[#allocation2 + $0x2] sm:$0x1] %vm309_vm4, %v2347_v53  ;;  %v1953_v53 = vld [vmem:[%s2781_s1 + $0xf0] ss:$8 sps:$4 sm:$0xff]   ;;  %v641_v10 = vpop.permute.xlu1 %640 }
 0xd61   :  { %1025 = vmatpush1.bf16.msra.mxu0 %v1953_v53 }
 0xd64   :  { %v809_v36 = vpop.permute.xlu1 %808 }
 0xe15   :  { %v858_v45 = vpop.f32.mrf.mxu1 }
 0xe16   :  { %v865_v47 = vadd.f32 %v858_v45, %v816_v44  ;;  %v1863_v44 = vld [vmem:[%s2782_s2 + $0x2] sm:$0x3] }
 0xe17   :  { %v860_v48 = vpop.f32.mrf.mxu1  ;;  %v937_v45 = vrot.slane %v1863_v44, %v2294_v30 }
 0xe18   :  { %v1846_v50 = vmul.f32 -1.442695, %v865_v47  ;;  %v872_v55 = vadd.f32 %v860_v48, %v2307_v49  ;;  %v1958_v49 = vld [vmem:[%s2781_s1 + $0xe4] ss:$8 sps:$4 sm:$0xff]   ;;  %v941_v47 = vrot.slane %v1863_v44, %v51_v33 }
 0xe19   :  { %v862_v51 = vpop.f32.mrf.mxu1  ;;  %1026 = vmatprep.subr.bf16.mxu0 %v1958_v49 }
 0xe1a   :  { %2031 = vpow2.f32 %v1846_v50  ;;  %1027 = vmatpush1.bf16.msra.mxu0 %v1956_v16 }
 0xe1b   :  { %v863_v52 = vpop.f32.mrf.mxu1  ;;  %1028 = vmatprep.subr.bf16.mxu0 %v1961_v59 }
 0xe1e   :  { %1029 = vmatpush1.bf16.msra.mxu0 %v1959_v20 }
 0xe1f   :  { %1030 = vmatprep.subr.bf16.mxu0 %v1964_v61 }
 0xe22   :  { %1031 = vmatpush1.bf16.msra.mxu0 %v1962_v63 }
 0xe23   :  { %1032 = vmatprep.subr.bf16.mxu0 %v1967_v1 }
 0xe26   :  { %1033 = vmatpush1.bf16.msra.mxu0 %v1965_v3 }
 0xe27   :  { %v2032_v60 = vpop.eup %2031  ;;  %1034 = vmatprep.subr.bf16.mxu0 %v1970_v4 }
 0xe28   :  { %v869_v54 = vadd.f32 1.0, %v2032_v60 }
 0xe2a   :  { %2033 = vrcp.f32 %v869_v54  ;;  %1035 = vmatpush1.bf16.msra.mxu0 %v1968_v5 }
 0xe2b   :  { %1036 = vmatprep.subr.bf16.mxu0 %v1976_v21 }
 0xe2e   :  { %1037 = vmatpush1.bf16.msra.mxu0 %v1974_v22 }
 0xe2f   :  { %1038 = vmatprep.subr.bf16.mxu0 %v1982_v26 }
 0xe32   :  { %1039 = vmatpush1.bf16.msra.mxu0 %v1980_v32 }
 0xe33   :  { %1289 = vmatprep.subr.bf16.mxu0 %v2490_v7 }
 0xe37   :  { %v2034_v9 = vpop.eup %2033 }
 0xe38   :  { %v873_v56 = vmul.f32 %v2034_v9, %v872_v55  ;;  %v879_v6 = vsub.f32 1.0, %v2034_v9  ;;  %v885_v14 = vmul.f32 %v2034_v9, %v2409_v35 }
 0xe3a   :  { %v877_v11 = vadd.f32 %v875_v57, %v873_v56 }
 0xe3c   :  { %2035 = vtanh.f32 %v877_v11 }
 0xe49   :  { %v2036_v12 = vpop.eup %2035 }
 0xe4a   :  { %881 = vrot.lane.b32.xlu0 %v2036_v12, %s2130_s26 }
 0xe4e   :  { %388 = vrot.lane.b32.xlu0 %v387_v58, %s2130_s26 }
 0xe52   :  { %556 = vrot.lane.b32.xlu0 %v555_v18, %s2130_s26 }
 0xe56   :  { %724 = vrot.lane.b32.xlu0 %v723_v62, %s2130_s26 }
 0xebc   :  { %v882_v8 = vpop.permute.xlu0 %881 }
 0xebd   :  { %v884_v17 = vmul.f32 %v882_v8, %v879_v6 }
 0xebf   :  { %v2516_v25 = vadd.f32 %v885_v14, %v884_v17 }
 0xec0   :  { %v389_v31 = vpop.permute.xlu0 %388 }
 0xec1   :  { %391 = vst.msk [vmem:[#allocation2 + $0x1] sm:$0x1] %vm303_vm1, %v389_v31  ;;  %v891_v34 = vrot.slane %v2516_v25, %v2294_v30 }
 0xec2   :  { %392 = vst.msk [vmem:[#allocation2 + $0x6] sm:$0x1] %vm305_vm2, %v389_v31 }
 0xec3   :  { %393 = vst.msk [vmem:[#allocation2 + $0x6] sm:$0x1] %vm307_vm3, %v2329_v27  ;;  %892 = vrot.lane.b32.xlu0 %v891_v34, %s2130_s26 }
 0xec4   :  { %394 = vst.msk [vmem:[#allocation2 + $0x1] sm:$0x1] %vm309_vm4, %v2329_v27  ;;  %v557_v27 = vpop.permute.xlu0 %556 }
 0xec5   :  { %811 = vst.msk [vmem:[#allocation2 + $0x6] sm:$0x1] %vm303_vm1, %v809_v36  ;;  %559 = vst.msk [vmem:[#allocation2 + $0x3] sm:$0x1] %vm303_vm1, %v557_v27 }
 0xec6   :  { %812 = vst.msk [vmem:[#allocation2 + $0x1] sm:$0x1] %vm305_vm2, %v809_v36  ;;  %560 = vst.msk [vmem:[#allocation2 + $0x4] sm:$0x1] %vm305_vm2, %v557_v27 }
 0xec7   :  { %813 = vst.msk [vmem:[#allocation2 + $0x1] sm:$0x1] %vm307_vm3, %v2409_v35  ;;  %561 = vst.msk [vmem:[#allocation2 + $0x4] sm:$0x1] %vm307_vm3, %v2365_v19 }
 0xec8   :  { %814 = vst.msk [vmem:[#allocation2 + $0x6] sm:$0x1] %vm309_vm4, %v2409_v35  ;;  %562 = vst.msk [vmem:[#allocation2 + $0x3] sm:$0x1] %vm309_vm4, %v2365_v19  ;;  %v2568_v35 = vld [vmem:[%s2783_s3 + $0x40] ss:$8 sps:$4 sm:$0xff]   ;;  %v725_v19 = vpop.permute.xlu0 %724 }
 0xec9   :  { %643 = vst.msk [vmem:[#allocation2 + $0x4] sm:$0x1] %vm303_vm1, %v641_v10  ;;  %727 = vst.msk [vmem:[#allocation2 + $0x5] sm:$0x1] %vm303_vm1, %v725_v19  ;;  %1134 = vmatpush1.bf16.msra.mxu1 %v2568_v35 }
 0xeca   :  { %644 = vst.msk [vmem:[#allocation2 + $0x3] sm:$0x1] %vm305_vm2, %v641_v10  ;;  %728 = vst.msk [vmem:[#allocation2 + $0x2] sm:$0x1] %vm305_vm2, %v725_v19  ;;  %1208 = vmatprep.subr.bf16.mxu1 %v2490_v7 }
 0xecb   :  { %645 = vst.msk [vmem:[#allocation2 + $0x3] sm:$0x1] %vm307_vm3, %v2382_v46  ;;  %729 = vst.msk [vmem:[#allocation2 + $0x2] sm:$0x1] %vm307_vm3, %v2399_v0 }
 0xecc   :  { %646 = vst.msk [vmem:[#allocation2 + $0x4] sm:$0x1] %vm309_vm4, %v2382_v46  ;;  %730 = vst.msk [vmem:[#allocation2 + $0x5] sm:$0x1] %vm309_vm4, %v2399_v0  ;;  %1152 = vmatmul.mubr.bf16.vlgmr.msra.gmra.mxu1 %v2129_v2 }
 0xecd   :  { %1209 = vmatpush1.bf16.msra.mxu1 %v2495_v13  ;;  %1232 = vmatprep.mubr.bf16.mxu1 %v2129_v2 }
 0xece   :  { %1210 = vmatprep.subr.bf16.mxu1 %v2509_v23 }
 0xed1   :  { %1211 = vmatpush1.bf16.msra.mxu1 %v2514_v24 }
 0xed2   :  { %1212 = vmatprep.subr.bf16.mxu1 %v2524_v29 }
 0xed5   :  { %1213 = vmatpush1.bf16.msra.mxu1 %v2542_v37 }
 0xed6   :  { %1214 = vmatprep.subr.bf16.mxu1 %v2551_v38 }
 0xed9   :  { %1215 = vmatpush1.bf16.msra.mxu1 %v2568_v35 }
 0xeda   :  { %1370 = vmatprep.subr.bf16.mxu1 %v2490_v7 }
 0xf35   :  { %v893_v46 = vpop.permute.xlu0 %892 }
 0xf36   :  { %895 = vst.msk [vmem:[#allocation2 + $0x7] sm:$0x1] %vm303_vm1, %v893_v46 }
 0xf37   :  { %896 = vst.msk [vmem:[#allocation2] sm:$0x1] %vm305_vm2, %v893_v46 }
 0xf38   :  { %897 = vst.msk [vmem:[#allocation2] sm:$0x1] %vm307_vm3, %v2516_v25 }
 0xf39   :  { %898 = vst.msk [vmem:[#allocation2 + $0x7] sm:$0x1] %vm309_vm4, %v2516_v25 }
 0xf40   :  { %v912_v0 = vld [vmem:[#allocation2] sm:$0xff] }
 0xf41   :  { %v913_v39 = vpack.c.bf16 %v912_v0, %v912_v0 }
 0xf43   :  { %1057 = vmatmul.mubr.bf16.vlgmr.msra.gmra.mxu0 %v913_v39 }
 0xf44   :  { %1290 = vmatpush1.bf16.msra.mxu0 %v2495_v13  ;;  %1313 = vmatprep.mubr.bf16.mxu0 %v2129_v2 }
 0xf45   :  { %1291 = vmatprep.subr.bf16.mxu0 %v2509_v23 }
 0xf48   :  { %1292 = vmatpush1.bf16.msra.mxu0 %v2514_v24 }
 0xf49   :  { %1293 = vmatprep.subr.bf16.mxu0 %v2524_v29 }
 0xf4c   :  { %1294 = vmatpush1.bf16.msra.mxu0 %v2542_v37 }
 0xf4d   :  { %1295 = vmatprep.subr.bf16.mxu0 %v2551_v38 }
 0xf50   :  { %1296 = vmatpush1.bf16.msra.mxu0 %v2568_v35 }
 0xf51   :  { %1451 = vmatprep.subr.bf16.mxu0 %v2490_v7 }
 0xf8c   :  { %v1153_v40 = vpop.f32.mrf.mxu1 }
 0xf8e   :  { %v1155_v41 = vpop.f32.mrf.mxu1 }
 0xf8f   :  { %v1167_v33 = vadd.f32 %v2620_v28, %v1155_v41 }
 0xf90   :  { %v1157_v42 = vpop.f32.mrf.mxu1 }
 0xf92   :  { %v1158_v43 = vpop.f32.mrf.mxu1 }
0x1003   :  { %v1058_v48 = vpop.f32.mrf.mxu0 }
0x1004   :  { %v1059_v50 = vadd.f32 %v1058_v48, %v937_v45 }
0x1005   :  { %v1060_v51 = vpop.f32.mrf.mxu0 }
0x1006   :  { %1065 = vst [vmem:[#allocation3] sm:$0xff] %v1059_v50  ;;  %v1061_v52 = vadd.f32 %v1060_v51, %v941_v47 }
0x1007   :  { %v1062_v60 = vpop.f32.mrf.mxu0 }
0x1008   :  { %1066 = vst.msk [vmem:[#allocation3 + $0x8] sm:$0xff] %vm177_vm0, %v1061_v52 }
0x1009   :  { %v1063_v54 = vpop.f32.mrf.mxu0 }
0x100f   :  { %v1078_v55 = vld [vmem:[#allocation3] ss:$8 sm:$0x3]  ;;  %v1192_v1 = vld [vmem:[#allocation3 + $0x1] ss:$8 sm:$0x3] }
0x1010   :  { %v1160_v9 = vadd.f32 %v1153_v40, %v1078_v55  ;;  %v1170_v53 = vrot.slane %v1078_v55, 1  ;;  %v1251_v26 = vrot.slane %v1192_v1, 1  ;;  %v1273_v41 = vld [vmem:[#allocation3 + $0x2] ss:$8 sm:$0x3] }
0x1011   :  { %v1332_v54 = vrot.slane %v1273_v41, 1 }
0x1012   :  { %v1897_v56 = vmul.f32 -1.442695, %v1160_v9 }
0x1014   :  { %2037 = vpow2.f32 %v1897_v56 }
0x1021   :  { %v2038_v57 = vpop.eup %2037 }
0x1022   :  { %v1164_v11 = vadd.f32 1.0, %v2038_v57 }
0x1024   :  { %2039 = vrcp.f32 %v1164_v11 }
0x1031   :  { %v2040_v12 = vpop.eup %2039 }
0x1032   :  { %v1168_v15 = vmul.f32 %v2040_v12, %v1167_v33  ;;  %v1174_v16 = vsub.f32 1.0, %v2040_v12  ;;  %v1180_v18 = vmul.f32 0.0, %v2040_v12 }
0x1034   :  { %v1172_v49 = vadd.f32 %v1170_v53, %v1168_v15 }
0x1036   :  { %2041 = vtanh.f32 %v1172_v49 }
0x1043   :  { %v2042_v58 = vpop.eup %2041 }
0x1044   :  { %1176 = vrot.lane.b32.xlu1 %v2042_v58, %s2130_s26  ;;  %v1354_v58 = vld [vmem:[#allocation3 + $0x3] ss:$8 sm:$0x3] }
0x10b6   :  { %v1177_v59 = vpop.permute.xlu1 %1176 }
0x10b7   :  { %v1179_v20 = vmul.f32 %v1177_v59, %v1174_v16 }
0x10b9   :  { %v2624_v61 = vadd.f32 %v1180_v18, %v1179_v20 }
0x10bb   :  { %v1193_v62 = vpack.c.bf16 %v2624_v61, %v2624_v61 }
0x10bd   :  { %1195 = vrot.lane.b32.xlu0 %v1193_v62, %s2130_s26 }
0x112f   :  { %v1196_v63 = vpop.permute.xlu0 %1195 }
0x1130   :  { %1898 = vmatmul.mubr.msk.bf16.vlgmr.msra.gmra.mxu1 %vm177_vm0, %v1196_v63 }
0x1131   :  { %1371 = vmatpush1.bf16.msra.mxu1 %v2495_v13  ;;  %1394 = vmatprep.mubr.bf16.mxu1 %v2129_v2 }
0x1132   :  { %1372 = vmatprep.subr.bf16.mxu1 %v2509_v23 }
0x1135   :  { %1373 = vmatpush1.bf16.msra.mxu1 %v2514_v24 }
0x1136   :  { %1374 = vmatprep.subr.bf16.mxu1 %v2524_v29 }
0x1139   :  { %1375 = vmatpush1.bf16.msra.mxu1 %v2542_v37 }
0x113a   :  { %1376 = vmatprep.subr.bf16.mxu1 %v2551_v38 }
0x113d   :  { %1377 = vmatpush1.bf16.msra.mxu1 %v2568_v35 }
0x113e   :  { %1532 = vmatprep.subr.bf16.mxu1 %v2490_v7 }
0x11f0   :  { %v1234_v3 = vpop.f32.mrf.mxu1 }
0x11f1   :  { %v1241_v4 = vadd.f32 %v1234_v3, %v1192_v1 }
0x11f2   :  { %v1236_v5 = vpop.f32.mrf.mxu1 }
0x11f3   :  { %v1899_v6 = vmul.f32 -1.442695, %v1241_v4  ;;  %v1248_v21 = vadd.f32 %v2620_v28, %v1236_v5 }
0x11f4   :  { %v1238_v10 = vpop.f32.mrf.mxu1 }
0x11f5   :  { %2043 = vpow2.f32 %v1899_v6  ;;  %v1413_v6 = vrot.slane %v1354_v58, 1 }
0x11f6   :  { %v1239_v8 = vpop.f32.mrf.mxu1 }
0x1202   :  { %v2044_v14 = vpop.eup %2043 }
0x1203   :  { %v1245_v17 = vadd.f32 1.0, %v2044_v14 }
0x1205   :  { %2045 = vrcp.f32 %v1245_v17 }
0x1212   :  { %v2046_v22 = vpop.eup %2045 }
0x1213   :  { %v1249_v31 = vmul.f32 %v2046_v22, %v1248_v21  ;;  %v1255_v36 = vsub.f32 1.0, %v2046_v22  ;;  %v1261_v19 = vmul.f32 %v2046_v22, %v2624_v61 }
0x1215   :  { %v1253_v32 = vadd.f32 %v1251_v26, %v1249_v31 }
0x1217   :  { %2047 = vtanh.f32 %v1253_v32 }
0x1224   :  { %v2048_v34 = vpop.eup %2047 }
0x1225   :  { %1257 = vrot.lane.b32.xlu1 %v2048_v34, %s2130_s26  ;;  %v1435_v34 = vld [vmem:[#allocation3 + $0x4] ss:$8 sm:$0x3] }
0x1297   :  { %v1258_v27 = vpop.permute.xlu1 %1257 }
0x1298   :  { %v1260_v46 = vmul.f32 %v1258_v27, %v1255_v36 }
0x129a   :  { %v2642_v0 = vadd.f32 %v1261_v19, %v1260_v46 }
0x129c   :  { %v1274_v39 = vpack.c.bf16 %v2642_v0, %v2642_v0 }
0x129e   :  { %1276 = vrot.lane.b32.xlu0 %v1274_v39, %s2130_s26 }
0x1310   :  { %v1277_v40 = vpop.permute.xlu0 %1276 }
0x1311   :  { %1900 = vmatmul.mubr.msk.bf16.vlgmr.msra.gmra.mxu0 %vm177_vm0, %v1277_v40 }
0x1312   :  { %1452 = vmatpush1.bf16.msra.mxu0 %v2495_v13  ;;  %1475 = vmatprep.mubr.bf16.mxu0 %v2129_v2 }
0x1313   :  { %1453 = vmatprep.subr.bf16.mxu0 %v2509_v23 }
0x1316   :  { %1454 = vmatpush1.bf16.msra.mxu0 %v2514_v24 }
0x1317   :  { %1455 = vmatprep.subr.bf16.mxu0 %v2524_v29 }
0x131a   :  { %1456 = vmatpush1.bf16.msra.mxu0 %v2542_v37 }
0x131b   :  { %1457 = vmatprep.subr.bf16.mxu0 %v2551_v38 }
0x131e   :  { %1458 = vmatpush1.bf16.msra.mxu0 %v2568_v35 }
0x131f   :  { %1613 = vmatprep.subr.bf16.mxu0 %v2490_v7 }
0x13d1   :  { %v1315_v42 = vpop.f32.mrf.mxu0 }
0x13d2   :  { %v1322_v43 = vadd.f32 %v1315_v42, %v1273_v41 }
0x13d3   :  { %v1317_v44 = vpop.f32.mrf.mxu0 }
0x13d4   :  { %v1901_v45 = vmul.f32 -1.442695, %v1322_v43  ;;  %v1329_v52 = vadd.f32 %v2620_v28, %v1317_v44 }
0x13d5   :  { %v1319_v47 = vpop.f32.mrf.mxu0 }
0x13d6   :  { %2049 = vpow2.f32 %v1901_v45  ;;  %v1494_v45 = vrot.slane %v1435_v34, 1 }
0x13d7   :  { %v1320_v48 = vpop.f32.mrf.mxu0 }
0x13e3   :  { %v2050_v50 = vpop.eup %2049 }
0x13e4   :  { %v1326_v51 = vadd.f32 1.0, %v2050_v50 }
0x13e6   :  { %2051 = vrcp.f32 %v1326_v51 }
0x13f3   :  { %v2052_v60 = vpop.eup %2051 }
0x13f4   :  { %v1330_v55 = vmul.f32 %v2052_v60, %v1329_v52  ;;  %v1336_v57 = vsub.f32 1.0, %v2052_v60  ;;  %v1342_v33 = vmul.f32 %v2052_v60, %v2642_v0 }
0x13f6   :  { %v1334_v9 = vadd.f32 %v1332_v54, %v1330_v55 }
0x13f8   :  { %2053 = vtanh.f32 %v1334_v9 }
0x1405   :  { %v2054_v56 = vpop.eup %2053 }
0x1406   :  { %1338 = vrot.lane.b32.xlu1 %v2054_v56, %s2130_s26 }
0x1478   :  { %v1339_v11 = vpop.permute.xlu1 %1338 }
0x1479   :  { %v1341_v12 = vmul.f32 %v1339_v11, %v1336_v57  ;;  %v1516_v57 = vld [vmem:[#allocation3 + $0x5] ss:$8 sm:$0x3] }
0x147b   :  { %v2660_v53 = vadd.f32 %v1342_v33, %v1341_v12 }
0x147d   :  { %v1355_v15 = vpack.c.bf16 %v2660_v53, %v2660_v53 }
0x147f   :  { %1357 = vrot.lane.b32.xlu0 %v1355_v15, %s2130_s26 }
0x14f1   :  { %v1358_v49 = vpop.permute.xlu0 %1357 }
0x14f2   :  { %1902 = vmatmul.mubr.msk.bf16.vlgmr.msra.gmra.mxu1 %vm177_vm0, %v1358_v49 }
0x14f3   :  { %1533 = vmatpush1.bf16.msra.mxu1 %v2495_v13  ;;  %1556 = vmatprep.mubr.bf16.mxu1 %v2129_v2 }
0x14f4   :  { %1534 = vmatprep.subr.bf16.mxu1 %v2509_v23 }
0x14f7   :  { %1535 = vmatpush1.bf16.msra.mxu1 %v2514_v24 }
0x14f8   :  { %1536 = vmatprep.subr.bf16.mxu1 %v2524_v29 }
0x14fb   :  { %1537 = vmatpush1.bf16.msra.mxu1 %v2542_v37 }
0x14fc   :  { %1538 = vmatprep.subr.bf16.mxu1 %v2551_v38 }
0x14ff   :  { %1539 = vmatpush1.bf16.msra.mxu1 %v2568_v35 }
0x1500   :  { %1694 = vmatprep.subr.bf16.mxu1 %v2490_v7 }
0x15b2   :  { %v1396_v16 = vpop.f32.mrf.mxu1 }
0x15b3   :  { %v1403_v59 = vadd.f32 %v1396_v16, %v1354_v58  ;;  %v1575_v58 = vrot.slane %v1516_v57, 1 }
0x15b4   :  { %v1398_v18 = vpop.f32.mrf.mxu1 }
0x15b5   :  { %v1903_v20 = vmul.f32 -1.442695, %v1403_v59  ;;  %v1410_v4 = vadd.f32 %v2620_v28, %v1398_v18 }
0x15b6   :  { %v1400_v62 = vpop.f32.mrf.mxu1 }
0x15b7   :  { %2055 = vpow2.f32 %v1903_v20 }
0x15b8   :  { %v1401_v63 = vpop.f32.mrf.mxu1 }
0x15c4   :  { %v2056_v1 = vpop.eup %2055 }
0x15c5   :  { %v1407_v3 = vadd.f32 1.0, %v2056_v1 }
0x15c7   :  { %2057 = vrcp.f32 %v1407_v3  ;;  %v1597_v3 = vld [vmem:[#allocation3 + $0x6] ss:$8 sm:$0x3] }
0x15d4   :  { %v2058_v5 = vpop.eup %2057 }
0x15d5   :  { %v1411_v10 = vmul.f32 %v2058_v5, %v1410_v4  ;;  %v1417_v7 = vsub.f32 1.0, %v2058_v5  ;;  %v1423_v21 = vmul.f32 %v2058_v5, %v2660_v53 }
0x15d7   :  { %v1415_v8 = vadd.f32 %v1413_v6, %v1411_v10 }
0x15d9   :  { %2059 = vtanh.f32 %v1415_v8 }
0x15e6   :  { %v2060_v14 = vpop.eup %2059 }
0x15e7   :  { %1419 = vrot.lane.b32.xlu1 %v2060_v14, %s2130_s26 }
0x1659   :  { %v1420_v17 = vpop.permute.xlu1 %1419 }
0x165a   :  { %v1422_v22 = vmul.f32 %v1420_v17, %v1417_v7 }
0x165c   :  { %v2678_v26 = vadd.f32 %v1423_v21, %v1422_v22 }
0x165e   :  { %v1436_v31 = vpack.c.bf16 %v2678_v26, %v2678_v26 }
0x1660   :  { %1438 = vrot.lane.b32.xlu0 %v1436_v31, %s2130_s26  ;;  %v1656_v31 = vrot.slane %v1597_v3, 1 }
0x16d2   :  { %v1439_v32 = vpop.permute.xlu0 %1438 }
0x16d3   :  { %1904 = vmatmul.mubr.msk.bf16.vlgmr.msra.gmra.mxu0 %vm177_vm0, %v1439_v32 }
0x16d4   :  { %1614 = vmatpush1.bf16.msra.mxu0 %v2495_v13  ;;  %1637 = vmatprep.mubr.bf16.mxu0 %v2129_v2 }
0x16d5   :  { %1615 = vmatprep.subr.bf16.mxu0 %v2509_v23 }
0x16d8   :  { %1616 = vmatpush1.bf16.msra.mxu0 %v2514_v24 }
0x16d9   :  { %1617 = vmatprep.subr.bf16.mxu0 %v2524_v29 }
0x16dc   :  { %1618 = vmatpush1.bf16.msra.mxu0 %v2542_v37 }
0x16dd   :  { %1619 = vmatprep.subr.bf16.mxu0 %v2551_v38 }
0x16e0   :  { %1620 = vmatpush1.bf16.msra.mxu0 %v2568_v35 }
0x1793   :  { %v1477_v36 = vpop.f32.mrf.mxu0 }
0x1794   :  { %v1484_v27 = vadd.f32 %v1477_v36, %v1435_v34 }
0x1795   :  { %v1479_v19 = vpop.f32.mrf.mxu0 }
0x1796   :  { %v1905_v46 = vmul.f32 -1.442695, %v1484_v27  ;;  %v1491_v43 = vadd.f32 %v2620_v28, %v1479_v19 }
0x1797   :  { %v1481_v39 = vpop.f32.mrf.mxu0 }
0x1798   :  { %2061 = vpow2.f32 %v1905_v46 }
0x1799   :  { %v1482_v40 = vpop.f32.mrf.mxu0 }
0x17a5   :  { %v2062_v41 = vpop.eup %2061 }
0x17a6   :  { %v1488_v42 = vadd.f32 1.0, %v2062_v41 }
0x17a8   :  { %2063 = vrcp.f32 %v1488_v42  ;;  %v1186_v42 = vrot.slane %v2624_v61, %v2294_v30 }
0x17b5   :  { %v2064_v44 = vpop.eup %2063 }
0x17b6   :  { %v1492_v47 = vmul.f32 %v2064_v44, %v1491_v43  ;;  %v1498_v51 = vsub.f32 1.0, %v2064_v44  ;;  %v1504_v60 = vmul.f32 %v2064_v44, %v2678_v26  ;;  %v1348_v43 = vrot.slane %v2660_v53, %v2294_v30 }
0x17b8   :  { %v1496_v48 = vadd.f32 %v1494_v45, %v1492_v47 }
0x17ba   :  { %2065 = vtanh.f32 %v1496_v48  ;;  %v1678_v48 = vld [vmem:[#allocation3 + $0x7] ss:$8 sm:$0x3] }
0x17c7   :  { %v2066_v50 = vpop.eup %2065 }
0x17c8   :  { %1500 = vrot.lane.b32.xlu1 %v2066_v50, %s2130_s26 }
0x183a   :  { %v1501_v52 = vpop.permute.xlu1 %1500 }
0x183b   :  { %v1503_v54 = vmul.f32 %v1501_v52, %v1498_v51 }
0x183d   :  { %v2695_v55 = vadd.f32 %v1504_v60, %v1503_v54 }
0x183f   :  { %v1517_v9 = vpack.c.bf16 %v2695_v55, %v2695_v55  ;;  %v1510_v44 = vrot.slane %v2695_v55, %v2294_v30 }
0x1841   :  { %1519 = vrot.lane.b32.xlu0 %v1517_v9, %s2130_s26 }
0x18b3   :  { %v1520_v56 = vpop.permute.xlu0 %1519 }
0x18b4   :  { %1906 = vmatmul.mubr.msk.bf16.vlgmr.msra.gmra.mxu1 %vm177_vm0, %v1520_v56 }
0x18b5   :  { %1695 = vmatpush1.bf16.msra.mxu1 %v2495_v13  ;;  %1718 = vmatprep.mubr.bf16.mxu1 %v2129_v2 }
0x18b6   :  { %1696 = vmatprep.subr.bf16.mxu1 %v2509_v23 }
0x18b9   :  { %1697 = vmatpush1.bf16.msra.mxu1 %v2514_v24 }
0x18ba   :  { %1698 = vmatprep.subr.bf16.mxu1 %v2524_v29 }
0x18bd   :  { %1699 = vmatpush1.bf16.msra.mxu1 %v2542_v37 }
0x18be   :  { %1700 = vmatprep.subr.bf16.mxu1 %v2551_v38 }
0x18c1   :  { %1701 = vmatpush1.bf16.msra.mxu1 %v2568_v35 }
0x1974   :  { %v1558_v11 = vpop.f32.mrf.mxu1 }
0x1975   :  { %v1565_v33 = vadd.f32 %v1558_v11, %v1516_v57 }
0x1976   :  { %v1560_v12 = vpop.f32.mrf.mxu1 }
0x1977   :  { %v1907_v15 = vmul.f32 -1.442695, %v1565_v33  ;;  %v1572_v24 = vadd.f32 %v2620_v28, %v1560_v12  ;;  %v1737_v33 = vrot.slane %v1678_v48, 1 }
0x1978   :  { %v1562_v13 = vpop.f32.mrf.mxu1 }
0x1979   :  { %2067 = vpow2.f32 %v1907_v15 }
0x197a   :  { %v1563_v2 = vpop.f32.mrf.mxu1 }
0x197b   :  { %v1267_v2 = vrot.slane %v2642_v0, %v2294_v30 }
0x1986   :  { %v2068_v49 = vpop.eup %2067 }
0x1987   :  { %v1569_v23 = vadd.f32 1.0, %v2068_v49  ;;  %v1429_v49 = vrot.slane %v2678_v26, %v2294_v30 }
0x1989   :  { %2069 = vrcp.f32 %v1569_v23 }
0x1996   :  { %v2070_v29 = vpop.eup %2069 }
0x1997   :  { %v1573_v37 = vmul.f32 %v2070_v29, %v1572_v24  ;;  %v1579_v35 = vsub.f32 1.0, %v2070_v29  ;;  %v1585_v18 = vmul.f32 %v2070_v29, %v2695_v55 }
0x1999   :  { %v1577_v16 = vadd.f32 %v1575_v58, %v1573_v37 }
0x199b   :  { %2071 = vtanh.f32 %v1577_v16 }
0x19a8   :  { %v2072_v38 = vpop.eup %2071 }
0x19a9   :  { %1581 = vrot.lane.b32.xlu1 %v2072_v38, %s2130_s26 }
0x1a1b   :  { %v1582_v59 = vpop.permute.xlu1 %1581 }
0x1a1c   :  { %v1584_v20 = vmul.f32 %v1582_v59, %v1579_v35 }
0x1a1e   :  { %v2712_v62 = vadd.f32 %v1585_v18, %v1584_v20 }
0x1a20   :  { %v1598_v63 = vpack.c.bf16 %v2712_v62, %v2712_v62 }
0x1a22   :  { %1600 = vrot.lane.b32.xlu0 %v1598_v63, %s2130_s26 }
0x1a94   :  { %v1601_v1 = vpop.permute.xlu0 %1600 }
0x1a95   :  { %1908 = vmatmul.mubr.msk.bf16.vlgmr.msra.gmra.mxu0 %vm177_vm0, %v1601_v1 }
0x1b55   :  { %v1639_v4 = vpop.f32.mrf.mxu0 }
0x1b56   :  { %v1646_v5 = vadd.f32 %v1639_v4, %v1597_v3 }
0x1b57   :  { %v1641_v6 = vpop.f32.mrf.mxu0 }
0x1b58   :  { %v1909_v10 = vmul.f32 -1.442695, %v1646_v5  ;;  %v1653_v21 = vadd.f32 %v2620_v28, %v1641_v6 }
0x1b59   :  { %v1643_v8 = vpop.f32.mrf.mxu0 }
0x1b5a   :  { %2073 = vpow2.f32 %v1909_v10 }
0x1b5b   :  { %v1644_v14 = vpop.f32.mrf.mxu0 }
0x1b67   :  { %v2074_v7 = vpop.eup %2073 }
0x1b68   :  { %v1650_v17 = vadd.f32 1.0, %v2074_v7 }
0x1b6a   :  { %2075 = vrcp.f32 %v1650_v17 }
0x1b77   :  { %v2076_v22 = vpop.eup %2075 }
0x1b78   :  { %v1654_v32 = vmul.f32 %v2076_v22, %v1653_v21  ;;  %v1660_v27 = vsub.f32 1.0, %v2076_v22  ;;  %v1666_v46 = vmul.f32 %v2076_v22, %v2712_v62 }
0x1b7a   :  { %v1658_v34 = vadd.f32 %v1656_v31, %v1654_v32 }
0x1b7c   :  { %2077 = vtanh.f32 %v1658_v34 }
0x1b89   :  { %v2078_v36 = vpop.eup %2077 }
0x1b8a   :  { %1662 = vrot.lane.b32.xlu1 %v2078_v36, %s2130_s26 }
0x1bfc   :  { %v1663_v19 = vpop.permute.xlu1 %1662 }
0x1bfd   :  { %v1665_v39 = vmul.f32 %v1663_v19, %v1660_v27 }
0x1bff   :  { %v1667_v40 = vadd.f32 %v1666_v46, %v1665_v39 }
0x1c01   :  { %v1679_v41 = vpack.c.bf16 %v1667_v40, %v1667_v40  ;;  %v1672_v45 = vrot.slane %v1667_v40, %v2294_v30 }
0x1c03   :  { %1681 = vrot.lane.b32.xlu0 %v1679_v41, %s2130_s26 }
0x1c07   :  { %1187 = vrot.lane.b32.xlu0 %v1186_v42, %s2130_s26 }
0x1c0b   :  { %1349 = vrot.lane.b32.xlu0 %v1348_v43, %s2130_s26 }
0x1c0f   :  { %1511 = vrot.lane.b32.xlu0 %v1510_v44, %s2130_s26 }
0x1c13   :  { %1673 = vrot.lane.b32.xlu0 %v1672_v45, %s2130_s26 }
0x1c17   :  { %899 = vrot.lane.b32.xlu0 %v2516_v25, %s2131_s4 }
0x1c75   :  { %v1682_v61 = vpop.permute.xlu0 %1681 }
0x1c76   :  { %1910 = vmatmul.mubr.msk.bf16.vlgmr.msra.gmra.mxu1 %vm177_vm0, %v1682_v61 }
0x1c79   :  { %v1188_v47 = vpop.permute.xlu0 %1187 }
0x1c7a   :  { %1190 = vst.msk [vmem:[#allocation2] sm:$0x1] %vm303_vm1, %v1188_v47 }
0x1c7b   :  { %1191 = vst.msk [vmem:[#allocation2 + $0x7] sm:$0x1] %vm305_vm2, %v1188_v47 }
0x1c7d   :  { %v1350_v53 = vpop.permute.xlu0 %1349 }
0x1c7e   :  { %1352 = vst.msk [vmem:[#allocation2 + $0x2] sm:$0x1] %vm303_vm1, %v1350_v53 }
0x1c7f   :  { %1353 = vst.msk [vmem:[#allocation2 + $0x5] sm:$0x1] %vm305_vm2, %v1350_v53 }
0x1c81   :  { %v1512_v23 = vpop.permute.xlu0 %1511 }
0x1c85   :  { %v1674_v29 = vpop.permute.xlu0 %1673 }
0x1c89   :  { %v900_v35 = vpop.permute.xlu0 %899 }
0x1c8a   :  { %v902_v18 = vadd.f32 %v900_v35, %v2516_v25 }
0x1d36   :  { %v1720_v50 = vpop.f32.mrf.mxu1 }
0x1d37   :  { %v1727_v51 = vadd.f32 %v1720_v50, %v1678_v48 }
0x1d38   :  { %v1722_v52 = vpop.f32.mrf.mxu1 }
0x1d39   :  { %v1911_v60 = vmul.f32 -1.442695, %v1727_v51  ;;  %v1734_v57 = vadd.f32 %v2620_v28, %v1722_v52  ;;  %v1591_v28 = vrot.slane %v2712_v62, %v2294_v30  ;;  %v907_v62 = vrot.slane %v902_v18, %v2294_v30 }
0x1d3a   :  { %v1724_v54 = vpop.f32.mrf.mxu1 }
0x1d3b   :  { %2079 = vpow2.f32 %v1911_v60 }
0x1d3c   :  { %v1725_v55 = vpop.f32.mrf.mxu1 }
0x1d48   :  { %v2080_v9 = vpop.eup %2079 }
0x1d49   :  { %v1731_v56 = vadd.f32 1.0, %v2080_v9 }
0x1d4b   :  { %2081 = vrcp.f32 %v1731_v56 }
0x1d58   :  { %v2082_v11 = vpop.eup %2081 }
0x1d59   :  { %v1735_v12 = vmul.f32 %v2082_v11, %v1734_v57  ;;  %v1741_v24 = vsub.f32 1.0, %v2082_v11  ;;  %v1747_v37 = vmul.f32 %v2082_v11, %v1667_v40 }
0x1d5b   :  { %v1739_v15 = vadd.f32 %v1737_v33, %v1735_v12 }
0x1d5d   :  { %2083 = vtanh.f32 %v1739_v15 }
0x1d6a   :  { %v2084_v13 = vpop.eup %2083 }
0x1d6b   :  { %1743 = vrot.lane.b32.xlu1 %v2084_v13, %s2130_s26 }
0x1d6f   :  { %1268 = vrot.lane.b32.xlu1 %v1267_v2, %s2130_s26 }
0x1d73   :  { %1430 = vrot.lane.b32.xlu1 %v1429_v49, %s2130_s26 }
0x1d77   :  { %1592 = vrot.lane.b32.xlu1 %v1591_v28, %s2130_s26 }
0x1ddd   :  { %v1744_v58 = vpop.permute.xlu1 %1743 }
0x1dde   :  { %v1746_v16 = vmul.f32 %v1744_v58, %v1741_v24 }
0x1de0   :  { %v1748_v38 = vadd.f32 %v1747_v37, %v1746_v16 }
0x1de1   :  { %v1269_v0 = vpop.permute.xlu1 %1268 }
0x1de2   :  { %1271 = vst.msk [vmem:[#allocation2 + $0x1] sm:$0x1] %vm303_vm1, %v1269_v0  ;;  %v1753_v26 = vrot.slane %v1748_v38, %v2294_v30 }
0x1de3   :  { %1272 = vst.msk [vmem:[#allocation2 + $0x6] sm:$0x1] %vm305_vm2, %v1269_v0  ;;  %1677 = vst.msk [vmem:[#allocation2 + $0x1] sm:$0x1] %vm305_vm2, %v1674_v29 }
0x1de4   :  { %1676 = vst.msk [vmem:[#allocation2 + $0x6] sm:$0x1] %vm303_vm1, %v1674_v29  ;;  %1754 = vrot.lane.b32.xlu1 %v1753_v26, %s2130_s26 }
0x1de5   :  { %v1431_v59 = vpop.permute.xlu1 %1430 }
0x1de6   :  { %1433 = vst.msk [vmem:[#allocation2 + $0x3] sm:$0x1] %vm303_vm1, %v1431_v59 }
0x1de7   :  { %1434 = vst.msk [vmem:[#allocation2 + $0x4] sm:$0x1] %vm305_vm2, %v1431_v59  ;;  %1515 = vst.msk [vmem:[#allocation2 + $0x3] sm:$0x1] %vm305_vm2, %v1512_v23 }
0x1de8   :  { %1514 = vst.msk [vmem:[#allocation2 + $0x4] sm:$0x1] %vm303_vm1, %v1512_v23  ;;  %1759 = vrot.lane.b32.xlu1 %v1748_v38, %s2131_s4 }
0x1de9   :  { %v1593_v20 = vpop.permute.xlu1 %1592 }
0x1dea   :  { %1595 = vst.msk [vmem:[#allocation2 + $0x5] sm:$0x1] %vm303_vm1, %v1593_v20 }
0x1deb   :  { %1596 = vst.msk [vmem:[#allocation2 + $0x2] sm:$0x1] %vm305_vm2, %v1593_v20 }
0x1dec   :  { %908 = vrot.lane.b32.xlu1 %v907_v62, %s2130_s26 }
0x1e56   :  { %v1755_v25 = vpop.permute.xlu1 %1754 }
0x1e57   :  { %1757 = vst.msk [vmem:[#allocation2 + $0x7] sm:$0x1] %vm303_vm1, %v1755_v25 }
0x1e58   :  { %1758 = vst.msk [vmem:[#allocation2] sm:$0x1] %vm305_vm2, %v1755_v25 }
0x1e5a   :  { %v1760_v63 = vpop.permute.xlu1 %1759 }
0x1e5b   :  { %v1762_v1 = vadd.f32 %v1760_v63, %v1748_v38 }
0x1e5d   :  { %v1767_v5 = vrot.slane %v1762_v1, %v2294_v30 }
0x1e5e   :  { %v909_v3 = vpop.permute.xlu1 %908 }
0x1e5f   :  { %v1772_v4 = vld [vmem:[#allocation2] sm:$0xff]  ;;  %911 = vst.msk [vmem:[#allocation6] sm:$0x1] %vm303_vm1, %v909_v3 }
0x1e60   :  { %1774 = vrot.lane.b32.xlu0 %v1772_v4, %s2131_s4 }
0x1e64   :  { %1768 = vrot.lane.b32.xlu0 %v1767_v5, %s2130_s26 }
0x1ed2   :  { %v1775_v6 = vpop.permute.xlu0 %1774 }
0x1ed3   :  { %v1777_v10 = vadd.f32 %v1775_v6, %v1772_v4 }
0x1ed5   :  { %1779 = vst.msk [vmem:[#allocation4] sm:$0xff] %vm1778_vm5, %v1777_v10 }
0x1ed6   :  { %v1769_v8 = vpop.permute.xlu0 %1768 }
0x1ed7   :  { %2096 = shalt.err (!%p2093_p4)
}
0x1ed8   :  { %1789 = dma.vmem_to_hbm [thread:$0]  %s1787_s29, 128, %s2785_s5, [#allocation5]   ;;  %1771 = vst.msk [vmem:[#allocation6 + $0x1] sm:$0x1] %vm303_vm1, %v1769_v8 }
0x1ed9   :  { %s2105_s10 = scalar_lea.vmem %s1797_s7, 32  ;;  %p2110_p6 = scmp.lt.s32.totalorder %s1797_s7, %s1797_s7 }
0x1eda   :  { %p2106_p5 = scmp.ne.s32.totalorder %s1797_s7, %s2105_s10  ;;  %p2111_p7 = scmp.lt.s32.totalorder %s2105_s10, %s2105_s10 }
0x1edc   :  { %p2112_p8 = por %p2111_p7, %p2110_p6 }
0x1ede   :  { %p2113_p9 = pnand %p2112_p8, %p2106_p5 }
0x1ee0   :  { %2116 = shalt.err (!%p2113_p9)
}
0x1ee1   :  { %1799 = dma.vmem_to_hbm [thread:$0]  %s1797_s7, 32, %s2786_s6, [#allocation7]  }
0x1ee2   :  { %2125 = dma.done.wait [#allocation5], 128  }
0x1ee3   :  { %2126 = vsyncadd [#allocation5], 4294967168 }
0x1ee4   :  { %2127 = dma.done.wait [#allocation7], 32  }
0x1ee5   :  { %2128 = vsyncadd [#allocation7], 4294967264 }
0x1ee6   :  { %1806 = vsyncpa [#allocation5], 1 }
0x1ee7   :  { %1807 = vsyncpa [#allocation7], 1 }

</bundles_post_ra>
